<compile_context>
chip_gen: v7x
topology: tpu7x:2x2x1
jax: 0.10.0
libtpu: 0.0.40
codegen_flags: <defaults>
</compile_context>

<pallas_src>
import jax
import jax.numpy as jnp
from jax import lax
from jax.experimental import pallas as pl
from jax.experimental.pallas import tpu as pltpu

EPS = 1e-5


# --------------------------- in-kernel helpers ---------------------------

def _conv3x3_taps(src_ref, w_ref, L, Wp):
    """3x3 conv as 9 accumulating MXU matmuls on row-shifted views of the flat
    padded image (src_ref rows are padded-row-major pixels, lanes are channels)."""
    acc = None
    for k in range(9):
        dy, dx = divmod(k, 3)
        lhs = src_ref[pl.ds(dy * Wp + dx, L), :]          # (L, Cp) bf16 view load
        part = jnp.dot(lhs, w_ref[k], preferred_element_type=jnp.float32)
        acc = part if acc is None else acc + part
    return acc                                            # (L, Cp) f32


def _masked_stats(acc, mask, stats_ref):
    """BN partials for this image over valid columns: row 0 = sum, row 1 = sum sq."""
    m = jnp.where(mask > 0.0, acc, 0.0)                   # zero junk pad columns
    stats_ref[0:1, :] = jnp.sum(m, axis=0, keepdims=True)
    stats_ref[1:2, :] = jnp.sum(m * acc, axis=0, keepdims=True)


# ------------------------------- kernels ---------------------------------

def _make_conv1_kernel(H, W):
    Wp, L = W + 2, H * (W + 2)

    def kernel(xflat_ref, w_ref, mask_ref, c_ref, stats_ref):
        acc = _conv3x3_taps(xflat_ref, w_ref, L, Wp)
        c_ref[...] = acc.astype(c_ref.dtype)
        _masked_stats(acc, mask_ref[...], stats_ref)

    return kernel


def _make_conv2_kernel(H, W, Cp, n_rows):
    Wp, L = W + 2, H * (W + 2)
    tail = n_rows - ((H + 1) * Wp + 1)                    # uncovered suffix rows

    def kernel(c1_ref, scale_ref, shift_ref, w_ref, mask_ref,
               c2_ref, stats_ref, ypad_ref):
        zdt = ypad_ref.dtype
        # bn1 (precomputed affine) + relu; junk pad columns forced to 0 so they land
        # on the ypad border positions as zeros.
        y = jnp.maximum(c1_ref[...].astype(jnp.float32) * scale_ref[...]
                        + shift_ref[...], 0.0)
        y = (y * mask_ref[...]).astype(zdt)
        # Zero the small uncovered prefix/suffix every step (megacore-safe), then one
        # contiguous interior store; together the three stores cover the whole scratch.
        ypad_ref[pl.ds(0, Wp + 1), :] = jnp.zeros((Wp + 1, Cp), zdt)
        ypad_ref[pl.ds((H + 1) * Wp + 1, tail), :] = jnp.zeros((tail, Cp), zdt)
        ypad_ref[pl.ds(Wp + 1, L), :] = y
        acc = _conv3x3_taps(ypad_ref, w_ref, L, Wp)
        c2_ref[...] = acc.astype(c2_ref.dtype)
        _masked_stats(acc, mask_ref[...], stats_ref)

    return kernel


def _bn_res_relu_kernel(c2_ref, x_ref, scale_ref, shift_ref, o_ref):
    """bn2 (precomputed affine) + residual add + relu (pointwise, flat layout)."""
    z = (c2_ref[...].astype(jnp.float32) * scale_ref[...] + shift_ref[...]
         + x_ref[...].astype(jnp.float32))
    o_ref[...] = jnp.maximum(z, 0.0).astype(o_ref.dtype)


# ------------------------------- wrapper ----------------------------------

def _bn_affine(stats, gamma_p, beta_p, count):
    """Finalize BN batch stats (tiny, plain JAX): per-channel scale/shift."""
    s = jnp.sum(stats[:, 0, :], axis=0)
    ss = jnp.sum(stats[:, 1, :], axis=0)
    mean = s / count
    var = jnp.maximum(ss / count - mean * mean, 0.0)       # biased (PyTorch train mode)
    scale = gamma_p * lax.rsqrt(var + EPS)
    shift = beta_p - mean * scale
    Cp = gamma_p.shape[0]
    return scale.reshape(1, Cp), shift.reshape(1, Cp)


def resblock_pallas(x_nchw, w1_oihw, g1, b1, w2_oihw, g2, b2, *, lane=128):
    N, C, H, W = x_nchw.shape
    Cout = w1_oihw.shape[0]
    assert C == Cout, "residual add requires in_channel == out_channel"
    Cp = ((C + lane - 1) // lane) * lane                   # lane-dense channel count
    Wp = W + 2
    L = H * Wp                                             # flat rows of c1/c2/out
    Lp = (H + 2) * Wp                                      # flat rows of padded image
    padr = (-Lp) % 8                                       # overrun rows for the last tap
    if padr < 2:
        padr += 8
    Lx = Lp + padr                                         # flat rows of conv inputs
    f32, bf16 = jnp.float32, jnp.bfloat16
    odt = x_nchw.dtype

    # ---- lane-dense NHWC, channels zero-padded to Cp ----
    x_nhwc = jnp.transpose(x_nchw, (0, 2, 3, 1))
    x_cp = jnp.pad(x_nhwc, ((0, 0), (0, 0), (0, 0), (0, Cp - C)))          # (N,H,W,Cp)
    # conv1 input: spatial halo, flattened padded-row-major, overrun rows, bf16
    xpad = jnp.pad(x_cp, ((0, 0), (1, 1), (1, 1), (0, 0)))                 # (N,H+2,Wp,Cp)
    xflat = jnp.pad(xpad.reshape(N, Lp, Cp),
                    ((0, 0), (0, padr), (0, 0))).astype(bf16)              # (N,Lx,Cp)
    # residual in the same flat "padded-row" layout as c1/c2 (junk columns = 0)
    xres = jnp.pad(x_cp, ((0, 0), (0, 0), (0, 2), (0, 0))).reshape(N, L, Cp)

    def pack_w(w_oihw):
        # (O,I,3,3) -> (3,3,I,O), pad I/O to Cp -> (9, Cp, Cp) per-tap bf16 matrices
        wk = jnp.transpose(w_oihw, (2, 3, 1, 0))
        wk = jnp.pad(wk, ((0, 0), (0, 0), (0, Cp - C), (0, Cp - C)))
        return wk.reshape(9, Cp, Cp).astype(bf16)

    w1k, w2k = pack_w(w1_oihw), pack_w(w2_oihw)
    g1p = jnp.pad(g1.astype(f32), (0, Cp - C))
    b1p = jnp.pad(b1.astype(f32), (0, Cp - C))
    g2p = jnp.pad(g2.astype(f32), (0, Cp - C))
    b2p = jnp.pad(b2.astype(f32), (0, Cp - C))

    # valid-column mask over the flat padded-row layout (1.0 for j < W, else 0.0)
    mask = jnp.tile((jnp.arange(Wp) < W).astype(f32), (H,)).reshape(L, 1)

    cparams = pltpu.CompilerParams(
        dimension_semantics=("parallel",),                 # megacore split on v7x
        vmem_limit_bytes=32 * 1024 * 1024)                 # plenty for these blocks

    flat_spec = pl.BlockSpec((None, L, Cp), lambda n: (n, 0, 0))
    xin_spec = pl.BlockSpec((None, Lx, Cp), lambda n: (n, 0, 0))
    w_spec = pl.BlockSpec((9, Cp, Cp), lambda n: (0, 0, 0))
    mask_spec = pl.BlockSpec((L, 1), lambda n: (0, 0))
    vec_spec = pl.BlockSpec((1, Cp), lambda n: (0, 0))
    stats_spec = pl.BlockSpec((None, 2, Cp), lambda n: (n, 0, 0))
    count = N * H * W

    # ---- pass 1: conv1 + per-image BN1 partial stats ----
    c1, stats1 = pl.pallas_call(
        _make_conv1_kernel(H, W),
        out_shape=(jax.ShapeDtypeStruct((N, L, Cp), bf16),
                   jax.ShapeDtypeStruct((N, 2, Cp), f32)),
        grid=(N,),
        in_specs=[xin_spec, w_spec, mask_spec],
        out_specs=(flat_spec, stats_spec),
        compiler_params=cparams,
    )(xflat, w1k, mask)

    scale1, shift1 = _bn_affine(stats1, g1p, b1p, count)

    # ---- pass 2: bn1 + relu -> conv2 + per-image BN2 partial stats ----
    c2, stats2 = pl.pallas_call(
        _make_conv2_kernel(H, W, Cp, Lx),
        out_shape=(jax.ShapeDtypeStruct((N, L, Cp), bf16),
                   jax.ShapeDtypeStruct((N, 2, Cp), f32)),
        grid=(N,),
        in_specs=[flat_spec, vec_spec, vec_spec, w_spec, mask_spec],
        out_specs=(flat_spec, stats_spec),
        scratch_shapes=[pltpu.VMEM((Lx, Cp), bf16)],
        compiler_params=cparams,
    )(c1, scale1, shift1, w2k, mask)

    scale2, shift2 = _bn_affine(stats2, g2p, b2p, count)

    # ---- pass 3: bn2 + residual add + relu (pointwise, flat layout) ----
    out_flat = pl.pallas_call(
        _bn_res_relu_kernel,
        out_shape=jax.ShapeDtypeStruct((N, L, Cp), odt),
        grid=(N,),
        in_specs=[flat_spec, flat_spec, vec_spec, vec_spec],
        out_specs=flat_spec,
        compiler_params=cparams,
    )(c2, xres, scale2, shift2)

    # Drop junk pad columns / lane padding and restore NCHW.  For chained layers,
    # keep the padded flat layout instead and skip this extra HBM round trip.
    out = out_flat.reshape(N, H, Wp, Cp)[:, :, :W, :C]
    return jnp.transpose(out, (0, 3, 1, 2))


# ------------------------------ reference ---------------------------------

def resblock_ref(x_nchw, w1, g1, b1, w2, g2, b2):
    """Pure-JAX f32 reference (NCHW, PyTorch training-mode BatchNorm)."""
    dn = ('NCHW', 'OIHW', 'NCHW')

    def bn(x, g, b):
        mean = jnp.mean(x, axis=(0, 2, 3), keepdims=True)
        var = jnp.mean((x - mean) ** 2, axis=(0, 2, 3), keepdims=True)
        return ((x - mean) * lax.rsqrt(var + EPS)
                * g.reshape(1, -1, 1, 1) + b.reshape(1, -1, 1, 1))

    y = lax.conv_general_dilated(x_nchw, w1, (1, 1), 'SAME', dimension_numbers=dn)
    y = jnp.maximum(bn(y, g1, b1), 0.0)
    z = lax.conv_general_dilated(y, w2, (1, 1), 'SAME', dimension_numbers=dn)
    z = bn(z, g2, b2) + x_nchw
    return jnp.maximum(z, 0.0)


if __name__ == "__main__":
    N, C, H, W = 2, 4, 16, 16          # in_channel == out_channel == 4
    key = jax.random.PRNGKey(0)
    kx, kw1, kw2 = jax.random.split(key, 3)

    x = jax.random.normal(kx, (N, C, H, W), jnp.float32)
    w1 = 0.1 * jax.random.normal(kw1, (C, C, 3, 3), jnp.float32)   # OIHW, no bias
    w2 = 0.1 * jax.random.normal(kw2, (C, C, 3, 3), jnp.float32)
    g1, b1 = jnp.ones((C,), jnp.float32), jnp.zeros((C,), jnp.float32)  # BN init
    g2, b2 = jnp.ones((C,), jnp.float32), jnp.zeros((C,), jnp.float32)

    out = resblock_pallas(x, w1, g1, b1, w2, g2, b2)
    out = jax.block_until_ready(out)

    ref = resblock_ref(x, w1, g1, b1, w2, g2, b2)
    assert out.shape == (N, C, H, W)
    assert bool(jnp.all(jnp.isfinite(out)))
    # bf16 matmul operands + bf16 intermediates -> relaxed tolerance vs f32 reference.
    err = float(jnp.max(jnp.abs(out - ref)))
    assert err < 0.1, f"max abs err {err}"
    print("KERNEL_OK")
</pallas_src>

<mosaic_0001>
module attributes {stable_mosaic.version = 11 : i64} {
  func.func @kernel(%arg0: i32, %arg1: memref<1x328x128xbf16, #tpu.memory_space<vmem>>, %arg2: memref<9x128x128xbf16, #tpu.memory_space<vmem>>, %arg3: memref<288x1xf32, #tpu.memory_space<vmem>>, %arg4: memref<1x288x128xbf16, #tpu.memory_space<vmem>>, %arg5: memref<1x2x128xf32, #tpu.memory_space<vmem>>) attributes {dimension_semantics = [#tpu.dimension_semantics<parallel>], iteration_bounds = array<i64: 2>, scalar_prefetch = 0 : i64, scratch_operands = 0 : i64, tpu.core_type = #tpu.core_type<tc>, window_params = [{transform_indices = @transform_0, window_bounds = array<i64: 1, 328, 128>}, {pipeline_mode = #tpu.pipeline_mode<synchronous>, transform_indices = @transform_1, window_bounds = array<i64: 9, 128, 128>}, {pipeline_mode = #tpu.pipeline_mode<synchronous>, transform_indices = @transform_2, window_bounds = array<i64: 288, 1>}, {transform_indices = @transform_3, window_bounds = array<i64: 1, 288, 128>}, {transform_indices = @transform_4, window_bounds = array<i64: 1, 2, 128>}]} {
    %c0 = arith.constant 0 : index
    %c0_0 = arith.constant 0 : index
    %c0_1 = arith.constant 0 : index
    %0 = vector.load %arg1[%c0, %c0_0, %c0_1] : memref<1x328x128xbf16, #tpu.memory_space<vmem>>, vector<1x288x128xbf16>
    %1 = vector.shape_cast %0 : vector<1x288x128xbf16> to vector<288x128xbf16>
    %c0_2 = arith.constant 0 : index
    %c0_3 = arith.constant 0 : index
    %c0_4 = arith.constant 0 : index
    %2 = vector.load %arg2[%c0_2, %c0_3, %c0_4] : memref<9x128x128xbf16, #tpu.memory_space<vmem>>, vector<1x128x128xbf16>
    %3 = vector.shape_cast %2 : vector<1x128x128xbf16> to vector<128x128xbf16>
    %cst = arith.constant dense<0.000000e+00> : vector<288x128xf32>
    %4 = tpu.matmul %1, %3, %cst {dimension_numbers = #tpu.dot_dimension_numbers<[1], [0], [0], [1], [0, 0, 1, 1], [], []>} : vector<288x128xbf16>, vector<128x128xbf16>, vector<288x128xf32> -> vector<288x128xf32>
    %c0_5 = arith.constant 0 : index
    %c1 = arith.constant 1 : index
    %c0_6 = arith.constant 0 : index
    %5 = vector.load %arg1[%c0_5, %c1, %c0_6] : memref<1x328x128xbf16, #tpu.memory_space<vmem>>, vector<1x288x128xbf16>
    %6 = vector.shape_cast %5 : vector<1x288x128xbf16> to vector<288x128xbf16>
    %c1_7 = arith.constant 1 : index
    %c0_8 = arith.constant 0 : index
    %c0_9 = arith.constant 0 : index
    %7 = vector.load %arg2[%c1_7, %c0_8, %c0_9] : memref<9x128x128xbf16, #tpu.memory_space<vmem>>, vector<1x128x128xbf16>
    %8 = vector.shape_cast %7 : vector<1x128x128xbf16> to vector<128x128xbf16>
    %cst_10 = arith.constant dense<0.000000e+00> : vector<288x128xf32>
    %9 = tpu.matmul %6, %8, %cst_10 {dimension_numbers = #tpu.dot_dimension_numbers<[1], [0], [0], [1], [0, 0, 1, 1], [], []>} : vector<288x128xbf16>, vector<128x128xbf16>, vector<288x128xf32> -> vector<288x128xf32>
    %10 = arith.addf %4, %9 : vector<288x128xf32>
    %c0_11 = arith.constant 0 : index
    %c2 = arith.constant 2 : index
    %c0_12 = arith.constant 0 : index
    %11 = vector.load %arg1[%c0_11, %c2, %c0_12] : memref<1x328x128xbf16, #tpu.memory_space<vmem>>, vector<1x288x128xbf16>
    %12 = vector.shape_cast %11 : vector<1x288x128xbf16> to vector<288x128xbf16>
    %c2_13 = arith.constant 2 : index
    %c0_14 = arith.constant 0 : index
    %c0_15 = arith.constant 0 : index
    %13 = vector.load %arg2[%c2_13, %c0_14, %c0_15] : memref<9x128x128xbf16, #tpu.memory_space<vmem>>, vector<1x128x128xbf16>
    %14 = vector.shape_cast %13 : vector<1x128x128xbf16> to vector<128x128xbf16>
    %cst_16 = arith.constant dense<0.000000e+00> : vector<288x128xf32>
    %15 = tpu.matmul %12, %14, %cst_16 {dimension_numbers = #tpu.dot_dimension_numbers<[1], [0], [0], [1], [0, 0, 1, 1], [], []>} : vector<288x128xbf16>, vector<128x128xbf16>, vector<288x128xf32> -> vector<288x128xf32>
    %16 = arith.addf %10, %15 : vector<288x128xf32>
    %c0_17 = arith.constant 0 : index
    %c18 = arith.constant 18 : index
    %c0_18 = arith.constant 0 : index
    %17 = vector.load %arg1[%c0_17, %c18, %c0_18] : memref<1x328x128xbf16, #tpu.memory_space<vmem>>, vector<1x288x128xbf16>
    %18 = vector.shape_cast %17 : vector<1x288x128xbf16> to vector<288x128xbf16>
    %c3 = arith.constant 3 : index
    %c0_19 = arith.constant 0 : index
    %c0_20 = arith.constant 0 : index
    %19 = vector.load %arg2[%c3, %c0_19, %c0_20] : memref<9x128x128xbf16, #tpu.memory_space<vmem>>, vector<1x128x128xbf16>
    %20 = vector.shape_cast %19 : vector<1x128x128xbf16> to vector<128x128xbf16>
    %cst_21 = arith.constant dense<0.000000e+00> : vector<288x128xf32>
    %21 = tpu.matmul %18, %20, %cst_21 {dimension_numbers = #tpu.dot_dimension_numbers<[1], [0], [0], [1], [0, 0, 1, 1], [], []>} : vector<288x128xbf16>, vector<128x128xbf16>, vector<288x128xf32> -> vector<288x128xf32>
    %22 = arith.addf %16, %21 : vector<288x128xf32>
    %c0_22 = arith.constant 0 : index
    %c19 = arith.constant 19 : index
    %c0_23 = arith.constant 0 : index
    %23 = vector.load %arg1[%c0_22, %c19, %c0_23] : memref<1x328x128xbf16, #tpu.memory_space<vmem>>, vector<1x288x128xbf16>
    %24 = vector.shape_cast %23 : vector<1x288x128xbf16> to vector<288x128xbf16>
    %c4 = arith.constant 4 : index
    %c0_24 = arith.constant 0 : index
    %c0_25 = arith.constant 0 : index
    %25 = vector.load %arg2[%c4, %c0_24, %c0_25] : memref<9x128x128xbf16, #tpu.memory_space<vmem>>, vector<1x128x128xbf16>
    %26 = vector.shape_cast %25 : vector<1x128x128xbf16> to vector<128x128xbf16>
    %cst_26 = arith.constant dense<0.000000e+00> : vector<288x128xf32>
    %27 = tpu.matmul %24, %26, %cst_26 {dimension_numbers = #tpu.dot_dimension_numbers<[1], [0], [0], [1], [0, 0, 1, 1], [], []>} : vector<288x128xbf16>, vector<128x128xbf16>, vector<288x128xf32> -> vector<288x128xf32>
    %28 = arith.addf %22, %27 : vector<288x128xf32>
    %c0_27 = arith.constant 0 : index
    %c20 = arith.constant 20 : index
    %c0_28 = arith.constant 0 : index
    %29 = vector.load %arg1[%c0_27, %c20, %c0_28] : memref<1x328x128xbf16, #tpu.memory_space<vmem>>, vector<1x288x128xbf16>
    %30 = vector.shape_cast %29 : vector<1x288x128xbf16> to vector<288x128xbf16>
    %c5 = arith.constant 5 : index
    %c0_29 = arith.constant 0 : index
    %c0_30 = arith.constant 0 : index
    %31 = vector.load %arg2[%c5, %c0_29, %c0_30] : memref<9x128x128xbf16, #tpu.memory_space<vmem>>, vector<1x128x128xbf16>
    %32 = vector.shape_cast %31 : vector<1x128x128xbf16> to vector<128x128xbf16>
    %cst_31 = arith.constant dense<0.000000e+00> : vector<288x128xf32>
    %33 = tpu.matmul %30, %32, %cst_31 {dimension_numbers = #tpu.dot_dimension_numbers<[1], [0], [0], [1], [0, 0, 1, 1], [], []>} : vector<288x128xbf16>, vector<128x128xbf16>, vector<288x128xf32> -> vector<288x128xf32>
    %34 = arith.addf %28, %33 : vector<288x128xf32>
    %c0_32 = arith.constant 0 : index
    %c36 = arith.constant 36 : index
    %c0_33 = arith.constant 0 : index
    %35 = vector.load %arg1[%c0_32, %c36, %c0_33] : memref<1x328x128xbf16, #tpu.memory_space<vmem>>, vector<1x288x128xbf16>
    %36 = vector.shape_cast %35 : vector<1x288x128xbf16> to vector<288x128xbf16>
    %c6 = arith.constant 6 : index
    %c0_34 = arith.constant 0 : index
    %c0_35 = arith.constant 0 : index
    %37 = vector.load %arg2[%c6, %c0_34, %c0_35] : memref<9x128x128xbf16, #tpu.memory_space<vmem>>, vector<1x128x128xbf16>
    %38 = vector.shape_cast %37 : vector<1x128x128xbf16> to vector<128x128xbf16>
    %cst_36 = arith.constant dense<0.000000e+00> : vector<288x128xf32>
    %39 = tpu.matmul %36, %38, %cst_36 {dimension_numbers = #tpu.dot_dimension_numbers<[1], [0], [0], [1], [0, 0, 1, 1], [], []>} : vector<288x128xbf16>, vector<128x128xbf16>, vector<288x128xf32> -> vector<288x128xf32>
    %40 = arith.addf %34, %39 : vector<288x128xf32>
    %c0_37 = arith.constant 0 : index
    %c37 = arith.constant 37 : index
    %c0_38 = arith.constant 0 : index
    %41 = vector.load %arg1[%c0_37, %c37, %c0_38] : memref<1x328x128xbf16, #tpu.memory_space<vmem>>, vector<1x288x128xbf16>
    %42 = vector.shape_cast %41 : vector<1x288x128xbf16> to vector<288x128xbf16>
    %c7 = arith.constant 7 : index
    %c0_39 = arith.constant 0 : index
    %c0_40 = arith.constant 0 : index
    %43 = vector.load %arg2[%c7, %c0_39, %c0_40] : memref<9x128x128xbf16, #tpu.memory_space<vmem>>, vector<1x128x128xbf16>
    %44 = vector.shape_cast %43 : vector<1x128x128xbf16> to vector<128x128xbf16>
    %cst_41 = arith.constant dense<0.000000e+00> : vector<288x128xf32>
    %45 = tpu.matmul %42, %44, %cst_41 {dimension_numbers = #tpu.dot_dimension_numbers<[1], [0], [0], [1], [0, 0, 1, 1], [], []>} : vector<288x128xbf16>, vector<128x128xbf16>, vector<288x128xf32> -> vector<288x128xf32>
    %46 = arith.addf %40, %45 : vector<288x128xf32>
    %c0_42 = arith.constant 0 : index
    %c38 = arith.constant 38 : index
    %c0_43 = arith.constant 0 : index
    %47 = vector.load %arg1[%c0_42, %c38, %c0_43] : memref<1x328x128xbf16, #tpu.memory_space<vmem>>, vector<1x288x128xbf16>
    %48 = vector.shape_cast %47 : vector<1x288x128xbf16> to vector<288x128xbf16>
    %c8 = arith.constant 8 : index
    %c0_44 = arith.constant 0 : index
    %c0_45 = arith.constant 0 : index
    %49 = vector.load %arg2[%c8, %c0_44, %c0_45] : memref<9x128x128xbf16, #tpu.memory_space<vmem>>, vector<1x128x128xbf16>
    %50 = vector.shape_cast %49 : vector<1x128x128xbf16> to vector<128x128xbf16>
    %cst_46 = arith.constant dense<0.000000e+00> : vector<288x128xf32>
    %51 = tpu.matmul %48, %50, %cst_46 {dimension_numbers = #tpu.dot_dimension_numbers<[1], [0], [0], [1], [0, 0, 1, 1], [], []>} : vector<288x128xbf16>, vector<128x128xbf16>, vector<288x128xf32> -> vector<288x128xf32>
    %52 = arith.addf %46, %51 : vector<288x128xf32>
    %53 = arith.truncf %52 : vector<288x128xf32> to vector<288x128xbf16>
    %c0_47 = arith.constant 0 : index
    %c0_48 = arith.constant 0 : index
    %c0_49 = arith.constant 0 : index
    %54 = vector.load %arg4[%c0_47, %c0_48, %c0_49] : memref<1x288x128xbf16, #tpu.memory_space<vmem>>, vector<1x288x128xbf16>
    %55 = vector.shape_cast %54 : vector<1x288x128xbf16> to vector<288x128xbf16>
    %56 = vector.shape_cast %53 : vector<288x128xbf16> to vector<1x288x128xbf16>
    tpu.vector_store %arg4[%c0_47, %c0_48, %c0_49], %56 {strides = array<i32>} : memref<1x288x128xbf16, #tpu.memory_space<vmem>>, vector<1x288x128xbf16>,
    %c0_50 = arith.constant 0 : index
    %c0_51 = arith.constant 0 : index
    %57 = vector.load %arg3[%c0_50, %c0_51] : memref<288x1xf32, #tpu.memory_space<vmem>>, vector<288x1xf32>
    %cst_52 = arith.constant 0.000000e+00 : f32
    %58 = vector.broadcast %cst_52 : f32 to vector<288x1xf32>
    %59 = arith.cmpf ogt, %57, %58 : vector<288x1xf32>
    %cst_53 = arith.constant 0.000000e+00 : f32
    %60 = vector.shape_cast %59 : vector<288x1xi1> to vector<288x1xi1>
    %61 = vector.broadcast %60 : vector<288x1xi1> to vector<288x128xi1>
    %62 = vector.broadcast %cst_53 : f32 to vector<288x128xf32>
    %63 = arith.select %61, %52, %62 : vector<288x128xi1>, vector<288x128xf32>
    %cst_54 = arith.constant dense<0.000000e+00> : vector<128xf32>
    %64 = vector.multi_reduction <add>, %63, %cst_54 [0] : vector<288x128xf32> to vector<128xf32>
    %65 = vector.shape_cast %64 : vector<128xf32> to vector<1x128xf32>
    %c0_55 = arith.constant 0 : index
    %c0_56 = arith.constant 0 : index
    %c0_57 = arith.constant 0 : index
    %66 = vector.load %arg5[%c0_55, %c0_56, %c0_57] : memref<1x2x128xf32, #tpu.memory_space<vmem>>, vector<1x1x128xf32>
    %67 = vector.shape_cast %66 : vector<1x1x128xf32> to vector<1x128xf32>
    %68 = vector.shape_cast %65 : vector<1x128xf32> to vector<1x1x128xf32>
    tpu.vector_store %arg5[%c0_55, %c0_56, %c0_57], %68 {strides = array<i32>} : memref<1x2x128xf32, #tpu.memory_space<vmem>>, vector<1x1x128xf32>,
    %69 = arith.mulf %63, %52 : vector<288x128xf32>
    %cst_58 = arith.constant dense<0.000000e+00> : vector<128xf32>
    %70 = vector.multi_reduction <add>, %69, %cst_58 [0] : vector<288x128xf32> to vector<128xf32>
    %71 = vector.shape_cast %70 : vector<128xf32> to vector<1x128xf32>
    %c0_59 = arith.constant 0 : index
    %c1_60 = arith.constant 1 : index
    %c0_61 = arith.constant 0 : index
    %72 = vector.load %arg5[%c0_59, %c1_60, %c0_61] : memref<1x2x128xf32, #tpu.memory_space<vmem>>, vector<1x1x128xf32>
    %73 = vector.shape_cast %72 : vector<1x1x128xf32> to vector<1x128xf32>
    %74 = vector.shape_cast %71 : vector<1x128xf32> to vector<1x1x128xf32>
    tpu.vector_store %arg5[%c0_59, %c1_60, %c0_61], %74 {strides = array<i32>} : memref<1x2x128xf32, #tpu.memory_space<vmem>>, vector<1x1x128xf32>,
    return
  }
  func.func @transform_0(%arg0: i32) -> (i32, i32, i32) {
    %c0_i32 = arith.constant 0 : i32
    %c0_i32_0 = arith.constant 0 : i32
    %c0_i32_1 = arith.constant 0 : i32
    return %arg0, %c0_i32, %c0_i32_0 : i32, i32, i32
  }
  func.func @transform_1(%arg0: i32) -> (i32, i32, i32) {
    %c0_i32 = arith.constant 0 : i32
    %c0_i32_0 = arith.constant 0 : i32
    %c0_i32_1 = arith.constant 0 : i32
    %c0_i32_2 = arith.constant 0 : i32
    return %c0_i32, %c0_i32_0, %c0_i32_1 : i32, i32, i32
  }
  func.func @transform_2(%arg0: i32) -> (i32, i32) {
    %c0_i32 = arith.constant 0 : i32
    %c0_i32_0 = arith.constant 0 : i32
    %c0_i32_1 = arith.constant 0 : i32
    return %c0_i32, %c0_i32_0 : i32, i32
  }
  func.func @transform_3(%arg0: i32) -> (i32, i32, i32) {
    %c0_i32 = arith.constant 0 : i32
    %c0_i32_0 = arith.constant 0 : i32
    %c0_i32_1 = arith.constant 0 : i32
    return %arg0, %c0_i32, %c0_i32_0 : i32, i32, i32
  }
  func.func @transform_4(%arg0: i32) -> (i32, i32, i32) {
    %c0_i32 = arith.constant 0 : i32
    %c0_i32_0 = arith.constant 0 : i32
    %c0_i32_1 = arith.constant 0 : i32
    return %arg0, %c0_i32, %c0_i32_0 : i32, i32, i32
  }
}

</mosaic_0001>

<bundles_post_ra>
// kernel: tpu_custom_call.1
= control target key start
LH: loop header
LB: loop body
LE: loop exit
PB: predicated region body
PF: predicated region fallthrough
CT: control target
= control target key end

     0   :  { %10 = vsyncpa [#allocation3], 0  ;;  %s7601_s0 = inlined_call_operand.hbm [shape: bf16[2,328,128], index: 0, kind: input, shape index: {}]   ;;  %s7602_s1 = inlined_call_operand.hbm [shape: bf16[9,128,128], index: 1, kind: input, shape index: {}]   ;;  %s7603_s2 = inlined_call_operand.vmem [shape: f32[288,1], index: 2, kind: input, shape index: {}]   ;;  %s7604_s3 = inlined_call_operand.hbm [shape: bf16[2,288,128], index: 3, kind: output, shape index: {0}]   ;;  %s7605_s4 = inlined_call_operand.hbm [shape: f32[2,2,128], index: 4, kind: output, shape index: {1}]  }
   0x1   :  { %12 = vsyncpa [#allocation3 + $0x1], 0 }
   0x2   :  { %13 = vsyncpa [#allocation6], 0 }
   0x3   :  { %14 = vsyncpa [#allocation4], 0 }
   0x4   :  { %16 = vsyncpa [#allocation4 + $0x1], 0 }
   0x5   :  { %17 = vsyncpa [#allocation9], 0 }
   0x6   :  { %19 = vsyncpa [#allocation9 + $0x1], 0  ;;  %s6456_s15 = smov 0   ;;  %s6458_s16 = smov 0  }
   0x7   :  { %s6460_s17 = smov 0   ;;  %s6462_s18 = smov 0  }
   0x8 LB: > { %s6477_s19 = sadd.s32 4294967295, %s6420_s18   ;;  %s4658_s20 = sadd.s32 4294967294, %s6420_s18   ;;  %s6420_s18 = sphi %s6462_s18, %s7625_s18   ;;  %s6416_s17 = sphi %s6460_s17, %s7624_s17   ;;  %s6412_s16 = sphi %s6458_s16, %s7623_s16   ;;  %s6408_s15 = sphi %s6456_s15, %s7622_s15  }
   0x9   : > { %p45_p0 = scmp.ne.s32.totalorder %s6412_s16, %s6408_s15  ;;  %p7606_p1 = scmp.eq.s32.totalorder %s6477_s19, 0 }
   0xa   : > { %p117_p3 = scmp.eq.s32.totalorder %s4658_s20, 1  ;;  %p4659_p5 = scmp.ge.s32.totalorder %s6420_s18, 1 }
   0xb   : > { %p6486_p4 = por %p7606_p1, %p45_p0  ;;  %p150_p7 = scmp.lt.s32.totalorder %s6420_s18, 3 }
   0xc   : > { %p6491_p6 = por %p117_p3, %p45_p0  ;;  %s6422_s24 = smov [#allocation5]  }
   0xd   : > { %s7609_s21 = scalar_select %p6486_p4, 1, 0 }
   0xe   : > { %s7610_s22 = scalar_select %p6491_p6, 1, 0 }
   0xf   : > { %p6496_p8 = pnand %p4659_p5, %p150_p7  ;;  %s162_s25 = sshll.u32 %s6422_s24, 4  ;;  %s6500_s25 = int_to_ptr.vmem [resolvable:$true] %s162_s25 }
  0x10   : > { %s6512_s27 = sadd.s32 1, %s6420_s18   ;;  %s32_s28 = sadd.s32 1, %s6416_s17 }
  0x11   : > { %s7611_s23 = scalar_select %p6496_p8, 1, 0 }
  0x12   : > { %p6005_p9 = pneg %p6496_p8  ;;  %s29_s29 = ssub.s32 %s6420_s18, %s6512_s27 }
  0x13   : > { %s6260_s6 = scalar_lea.hbm %s7602_s1, 9216 }
  0x14   : > { %p6507_p11 = pnand %p6005_p9, %p7606_p1  ;;  %p6261_p12 = scmp.ne.s32.totalorder %s7602_s1, %s6260_s6 }
  0x15   : > { %p6267_p5 = scmp.lt.u32.totalorder %s6260_s6, %s7602_s1 }
  0x16   : > { %p6262_p13 = pneg %p6507_p11 }
  0x18   : > { %p6263_p0 = pnand %p6262_p13, %p6261_p12 }
  0x1a   : > { %p6264_p3 = pneg %p6263_p0 }
  0x1c   : > { %p6269_p7 = pnand %p6267_p5, %p6264_p3 }
  0x1e   : > { %6272 = shalt.err (!%p6269_p7)
}
  0x1f   : > { %s6273_s11 = scalar_lea.vmem %s6500_s25, 9216  ;;  %p6281_p2 = scmp.lt.s32.totalorder %s6500_s25, %s6500_s25 }
  0x20   : > { %p6274_p9 = scmp.ne.s32.totalorder %s6500_s25, %s6273_s11  ;;  %p6282_p6 = scmp.lt.s32.totalorder %s6273_s11, %s6273_s11 }
  0x22   : > { %p6276_p10 = pnand %p6274_p9, %p6262_p13  ;;  %p6283_p4 = por %p6282_p6, %p6281_p2 }
  0x24   : > { %p6277_p1 = pneg %p6276_p10 }
  0x26   : > { %p6284_p8 = pnand %p6283_p4, %p6277_p1 }
  0x28   : > { %6287 = shalt.err (!%p6284_p8)
}
  0x29   : > { %s6423_s12 = smov 64   ;;  %s6424_s13 = smov 4  }
  0x2a   : > { %6008 = dma.hbm_to_vmem [thread:$0]  (!%p6507_p11), %s7602_s1, 9216, %s6500_s25, [#allocation6], %s6423_s12, %s6423_s12, %s6424_s13  }
  0x2b   : > { %p30_p1 = scmp.eq.s32.totalorder %s29_s29, 0  ;;  %p39_p2 = scmp.ne.s32.totalorder %s6416_s17, %s6412_s16 }
  0x2c   : > { %p40_p4 = scmp.eq.s32.totalorder %s6420_s18, 0  ;;  %p6021_p6 = scmp.lt.s32.totalorder %s6420_s18, 2 }
  0x2d   : > { %s6546_s24 = scalar_select %p30_p1, %s6416_s17, %s32_s28  }
  0x2e   : > { %p41_p8 = por %p40_p4, %p39_p2  ;;  %p7613_p10 = scmp.eq.s32.totalorder %s6477_s19, 1 }
  0x2f   : > { %s179_s26 = sand.u32 1, %s6416_s17   ;;  %s5991_s5 = smul.u32 2624, %s6420_s18 }
  0x30   : > { %p6550_p12 = por %p7613_p10, %p39_p2  ;;  %s5990_s6 = smul.u32 164, %s179_s26 }
  0x31   : > { %p6556_p13 = pnand %p6021_p6, %p41_p8  ;;  %s6563_s28 = scalar_lea.hbm %s7601_s0, %s5991_s5 }
  0x32   : > { %s183_s8 = scalar_lea.vmem [#allocation2], %s5990_s6  ;;  %s6567_s10 = scalar_lea.sflag [#allocation3], %s179_s26 }
  0x33   : > { %s190_s9 = sshll.u32 %s183_s8, 4  ;;  %s6288_s11 = scalar_lea.hbm %s6563_s28, 2624  ;;  %s6565_s9 = int_to_ptr.vmem [resolvable:$true] %s190_s9 }
  0x34   : > { %p6289_p11 = scmp.ne.s32.totalorder %s6563_s28, %s6288_s11  ;;  %p6290_p0 = pneg %p6556_p13 }
  0x35   : > { %s6293_s5 = scalar_lea.hbm %s7601_s0, 5248  ;;  %p6294_p7 = scmp.lt.u32.totalorder %s6563_s28, %s7601_s0 }
  0x36   : > { %p6291_p3 = pnand %p6290_p0, %p6289_p11  ;;  %p6295_p9 = scmp.lt.u32.totalorder %s6293_s5, %s6288_s11 }
  0x37   : > { %p6297_p2 = scmp.lt.u32.totalorder %s6288_s11, %s6563_s28 }
  0x38   : > { %p6292_p5 = pneg %p6291_p3  ;;  %p6296_p1 = por %p6295_p9, %p6294_p7 }
  0x3a   : > { %p6298_p4 = por %p6297_p2, %p6296_p1 }
  0x3c   : > { %p6299_p6 = pnand %p6298_p4, %p6292_p5 }
  0x3e   : > { %6302 = shalt.err (!%p6299_p6)
}
  0x3f   : > { %s6303_s26 = scalar_lea.vmem %s6565_s9, 2624  ;;  %s6425_s6 = smov [#allocation2]  }
  0x40   : > { %p6304_p8 = scmp.ne.s32.totalorder %s6565_s9, %s6303_s26  ;;  %s6308_s8 = sshll.u32 %s6425_s6, 4  ;;  %s6309_s8 = int_to_ptr.vmem [resolvable:$false] %s6308_s8 }
  0x41   : > { %s6310_s14 = scalar_lea.vmem %s6309_s8, 5248  ;;  %p6311_p3 = scmp.lt.s32.totalorder %s6565_s9, %s6309_s8 }
  0x42   : > { %p6306_p10 = pnand %p6304_p8, %p6290_p0  ;;  %p6312_p7 = scmp.lt.s32.totalorder %s6310_s14, %s6303_s26 }
  0x44   : > { %p6307_p11 = pneg %p6306_p10  ;;  %p6313_p9 = por %p6312_p7, %p6311_p3 }
  0x46   : > { %p6314_p1 = pnand %p6313_p9, %p6307_p11 }
  0x48   : > { %6317 = shalt.err (!%p6314_p1)
}
  0x49   : > { %6012 = dma.hbm_to_vmem [thread:$0]  (!%p6556_p13), %s6563_s28, 2624, %s6565_s9, %s6567_s10, %s6423_s12, %s6423_s12, %s6424_s13  }
  0x4a   : > { %p7616_p0 = scmp.ne.s32.totalorder %s7611_s23, 0 }
  0x4b   : > { %s6601_s11 = sand.u32 (!%p7616_p0), 1, %s6412_s16   ;;  %p7617_p5 = scmp.ne.s32.totalorder (!%p7616_p0), %s7609_s21, 0 }
  0x4c   : > { %202 = sbr.rel (%p7616_p0) target bundleno = 703 (0x2bf), region = 32  ;;  %s205_s5 = scalar_lea.sflag (!%p7616_p0), [#allocation3], %s6601_s11 }
  0x4d   : > { %s5992_s20 = smul.u32 (!%p7616_p0), 164, %s6601_s11 }
  0x4f   : > { %s6605_s25 = scalar_lea.vmem (!%p7616_p0), [#allocation2], %s5992_s20 }
  0x53   : > { %6391 = dma.done.wait (%p7617_p5), %s205_s5, 2624  }
  0x54   : > { %6393 = vsyncadd (%p7617_p5), %s205_s5, 4294964672  ;;  %p7618_p13 = scmp.eq.s32.totalorder %s6477_s19, 0 }
  0x56   : > { %6395 = dma.done.wait (%p7618_p13), [#allocation6], 9216   ;;  %p7619_p2 = pmov %p7618_p13 }
  0x57   : > { %v6064_v0 = vld [vmem:[#allocation5 + $0x40] sm:$0xff]   ;;  %v6066_v2 = vld [vmem:[#allocation5 + $0x48] sm:$0xff]   ;;  %v6068_v4 = vld [vmem:[#allocation5 + $0x50] sm:$0xff]   ;;  %vm406_vm0 = vsmask.f32 7424  ;;  %vm2334_vm2 = vcmask 1045504  }
  0x58   : > { %6397 = vsyncadd (%p7619_p2), [#allocation6], 4294958080  ;;  %v6065_v1 = vld [vmem:[#allocation5 + $0x100] sm:$0xff]   ;;  %5218 = vmatprep.subr.bf16.mxu1 %v6064_v0  ;;  %v6067_v3 = vld [vmem:[#allocation5 + $0x108] sm:$0xff]   ;;  %vm1863_vm1 = vsmask.f32 6400 }
  0x59   : > { %5426 = vmatprep.subr.bf16.mxu0 %v6065_v1  ;;  %5219 = vmatpush3.bf16.msra.mxu1 %v6064_v0  ;;  %v6069_v5 = vld [vmem:[#allocation5 + $0x110] sm:$0xff]   ;;  %v6070_v6 = vld [vmem:[#allocation5 + $0x58] sm:$0xff]   ;;  %v6072_v8 = vld [vmem:[#allocation5 + $0x60] sm:$0xff]   ;;  %vm1062_vm3 = vcmask 1046528   ;;  %vm3135_vm15 = vsmask.f32 5376 }
  0x5a   : > { %5427 = vmatpush3.bf16.msra.mxu0 %v6065_v1  ;;  %5220 = vmatprep.subr.bf16.mxu1 %v6066_v2  ;;  %v6071_v7 = vld [vmem:[#allocation5 + $0x118] sm:$0xff]   ;;  %v6073_v9 = vld [vmem:[#allocation5 + $0x120] sm:$0xff]   ;;  %v6074_v10 = vld [vmem:[#allocation5 + $0x68] sm:$0xff]   ;;  %s5994_s20 = smul.u32 2304, %s6477_s19  ;;  %s4512_s13 = scalar_lea.sflag [#allocation4], %s6601_s11 }
  0x5b   : > { %5428 = vmatprep.subr.bf16.mxu0 %v6067_v3  ;;  %v6075_v11 = vld [vmem:[#allocation5 + $0x128] sm:$0xff]   ;;  %v243_v12 = vld [vmem:[%s6605_s25] sm:$0xf]  ;;  %v244_v13 = vld [vmem:[%s6605_s25 + $0x4] sm:$0xf]  ;;  %s6427_s28 = smov [#allocation7]  }
  0x5c   : > { %v6617_v14 = vcombine.low %v243_v12, %v244_v13  ;;  %v6620_v15 = vld [vmem:[%s6605_s25 + $0x8] sm:$0xff]   ;;  %v6076_v17 = vld [vmem:[#allocation5 + $0x70] sm:$0xff]   ;;  %v6078_v34 = vld [vmem:[#allocation5 + $0x78] sm:$0xff]   ;;  %s7522_s12 = scalar_lea.hbm %s7604_s3, %s5994_s20  ;;  %s6322_s9 = sshll.u32 %s6427_s28, 4  ;;  %s6323_s9 = int_to_ptr.vmem [resolvable:$false] %s6322_s9 }
  0x5d   : > { %5221 = vmatpush3.bf16.msra.mxu1 %v6066_v2  ;;  %v1379_v16 = vld [vmem:[%s6605_s25 + $0x8] sm:$0xe]  ;;  %v6624_v18 = vld [vmem:[%s6605_s25 + $0xc] sm:$0xf]  ;;  %v6077_v19 = vld [vmem:[#allocation5 + $0x130] sm:$0xff]   ;;  %v415_v22 = vshll.u32 %v6620_v15, 16 }
  0x5e   : > { %5429 = vmatpush3.bf16.msra.mxu0 %v6067_v3  ;;  %5222 = vmatprep.subr.bf16.mxu1 %v6068_v4  ;;  %v408_v20 = vshrl.u32 %v6617_v14, 16  ;;  %v410_v21 = vshll.u32 %v6617_v14, 16  ;;  %v6630_v23 = vcombine.low %v1379_v16, %v6624_v18  ;;  %v6633_v24 = vld [vmem:[%s6605_s25 + $0x10] sm:$0xff]   ;;  %v419_v32 = vshrl.u32 %v6620_v15, 16  ;;  %v6645_v38 = vld [vmem:[%s6605_s25 + $0x18] sm:$0xff]   ;;  %v6085_v49 = vld [vmem:[#allocation5] sm:$0xff]  }
  0x5f   : > { %5430 = vmatprep.subr.bf16.mxu0 %v6069_v5  ;;  %v6636_v25 = vld [vmem:[%s6605_s25 + $0x10] sm:$0xff]   ;;  %v417_v27 = vrot.slane %v415_v22, 1  ;;  %v1873_v30 = vshrl.u32 %v6633_v24, 16  ;;  %v1876_v31 = vshll.u32 %v6633_v24, 16  ;;  %v6079_v39 = vld [vmem:[#allocation5 + $0x138] sm:$0xff]   ;;  %v1882_v45 = vshrl.u32 %v6645_v38, 16 }
  0x60   : > { %v412_v26 = vrot.slane %v410_v21, 1  ;;  %v1865_v28 = vshrl.u32 %v6630_v23, 16  ;;  %v1868_v29 = vshll.u32 %v6630_v23, 16  ;;  %v423_v33 = vshll.u32 %v6636_v25, 16  ;;  %v6087_v52 = vld [vmem:[#allocation5 + $0x140] sm:$0xff]   ;;  %v6651_v53 = vld [vmem:[%s6605_s25 + $0x18] sm:$0xff]  }
  0x61   : > { %5223 = vmatpush3.bf16.msra.mxu1 %v6068_v4  ;;  %v1875_v40 = vrot.slane %v1873_v30, 1  ;;  %v1878_v41 = vrot.slane %v1876_v31, 2  ;;  %v1885_v46 = vshll.u32 %v6645_v38, 16  ;;  %v421_v48 = vor.u32 %v419_v32, %v417_v27  ;;  %v6656_v56 = vld [vmem:[%s6605_s25 + $0x20] sm:$0xff]   ;;  %v6663_v61 = vld [vmem:[%s6605_s25 + $0x28] sm:$0xff]   ;;  %v6684_v31 = vld [vmem:[%s6605_s25 + $0x30] sm:$0xff]  }
  0x62   : > { %5431 = vmatpush3.bf16.msra.mxu0 %v6069_v5  ;;  %5224 = vmatprep.subr.bf16.mxu1 %v6070_v6  ;;  %v413_v35 = vor.u32 %v412_v26, %v408_v20  ;;  %v1867_v36 = vrot.slane %v1865_v28, 1  ;;  %v1870_v37 = vrot.slane %v1868_v29, 2  ;;  %v425_v42 = vrot.slane %v423_v33, 1  ;;  %v6660_v60 = vld [vmem:[%s6605_s25 + $0x20] sm:$0xff]   ;;  %v6094_v12 = vld [vmem:[#allocation5 + $0x8] sm:$0xff]   ;;  %v6093_v20 = vld [vmem:[#allocation5 + $0x150] sm:$0xff]  }
  0x63   : > { %5432 = vmatprep.subr.bf16.mxu0 %v6071_v7  ;;  %v1879_v47 = vor.u32 %v1878_v41, %v1875_v40  ;;  %v1884_v50 = vrot.slane %v1882_v45, 1  ;;  %v1887_v51 = vrot.slane %v1885_v46, 2  ;;  %v427_v54 = vshrl.u32 %v6636_v25, 16  ;;  %v6675_v21 = vld [vmem:[%s6605_s25 + $0x28] sm:$0xff]   ;;  %v6680_v28 = vld [vmem:[%s6605_s25 + $0x30] sm:$0xff]   ;;  %v6095_v45 = vld [vmem:[#allocation5 + $0x158] sm:$0xff]  }
  0x64   : > { %v418_v43 = vsel %vm406_vm0, %v413_v35, %v417_v27  ;;  %v1871_v44 = vor.u32 %v1870_v37, %v1867_v36  ;;  %v431_v59 = vshll.u32 %v6651_v53, 16  ;;  %v426_v62 = vsel %vm406_vm0, %v421_v48, %v425_v42  ;;  %v6690_v35 = vld [vmem:[%s6605_s25 + $0x38] sm:$0xff]   ;;  %s6324_s10 = scalar_lea.vmem %s6323_s9, 4608 }
  0x65   : > { %5225 = vmatpush3.bf16.msra.mxu1 %v6070_v6  ;;  %5234 = vmatprep.mubr.bf16.mxu1 %v418_v43  ;;  %v1888_v57 = vor.u32 %v1887_v51, %v1884_v50  ;;  %v429_v58 = vor.u32 %v427_v54, %v425_v42  ;;  %v1891_v63 = vshrl.u32 %v6656_v56, 16  ;;  %v1894_v0 = vshll.u32 %v6656_v56, 16  ;;  %v6088_v6 = vld [vmem:[#allocation5 + $0x148] sm:$0xff]   ;;  %v6101_v51 = vld [vmem:[#allocation5 + $0x10] sm:$0xff]   ;;  %v6100_v54 = vld [vmem:[#allocation5 + $0x160] sm:$0xff]  }
  0x66   : > { %5433 = vmatpush3.bf16.msra.mxu0 %v6071_v7  ;;  %5226 = vmatprep.subr.bf16.mxu1 %v6072_v8  ;;  %v1880_v55 = vsel %vm1863_vm1, %v1871_v44, %v1879_v47  ;;  %v433_v1 = vrot.slane %v431_v59, 1  ;;  %v435_v2 = vshrl.u32 %v6651_v53, 16  ;;  %v439_v3 = vshll.u32 %v6660_v60, 16 }
  0x67   : > { %5434 = vmatprep.subr.bf16.mxu0 %v6073_v9  ;;  %5442 = vmatprep.mubr.bf16.mxu0 %v1880_v55  ;;  %v1900_v4 = vshrl.u32 %v6663_v61, 16  ;;  %v1889_v5 = vsel %vm1863_vm1, %v1879_v47, %v1888_v57  ;;  %v1893_v7 = vrot.slane %v1891_v63, 1  ;;  %v443_v22 = vshrl.u32 %v6660_v60, 16 }
  0x68   : > { %v441_v16 = vrot.slane %v439_v3, 1  ;;  %v447_v30 = vshll.u32 %v6675_v21, 16  ;;  %v1909_v32 = vshrl.u32 %v6680_v28, 16  ;;  %v1912_v33 = vshll.u32 %v6680_v28, 16  ;;  %v6712_v3 = vld [vmem:[%s6605_s25 + $0x48] sm:$0xff]  }
  0x69   : > { %5227 = vmatpush3.bf16.msra.mxu1 %v6072_v8  ;;  %v1896_v8 = vrot.slane %v1894_v0, 2  ;;  %v455_v40 = vshll.u32 %v6684_v31, 16  ;;  %v1918_v43 = vshrl.u32 %v6690_v35, 16  ;;  %v1921_v44 = vshll.u32 %v6690_v35, 16 }
  0x6a   : > { %5435 = vmatpush3.bf16.msra.mxu0 %v6073_v9  ;;  %5228 = vmatprep.subr.bf16.mxu1 %v6074_v10  ;;  %v1903_v9 = vshll.u32 %v6663_v61, 16  ;;  %v445_v29 = vor.u32 %v443_v22, %v441_v16  ;;  %v1911_v41 = vrot.slane %v1909_v32, 1  ;;  %v1914_v42 = vrot.slane %v1912_v33, 2  ;;  %v6723_v32 = vld [vmem:[%s6605_s25 + $0x48] sm:$0xff]  }
  0x6b   : > { %5436 = vmatprep.subr.bf16.mxu0 %v6075_v11  ;;  %v1897_v13 = vor.u32 %v1896_v8, %v1893_v7  ;;  %v457_v48 = vrot.slane %v455_v40, 1  ;;  %v1923_v50 = vrot.slane %v1921_v44, 2  ;;  %v459_v59 = vshrl.u32 %v6684_v31, 16 }
  0x6c   : > { %v1915_v47 = vor.u32 %v1914_v42, %v1911_v41  ;;  %v2336_v40 = vrot.slane %v6633_v24, 2  ;;  %v6733_v41 = vld [vmem:[%s6605_s25 + $0x50] sm:$0xff]   ;;  %v483_v44 = vshrl.u32 %v6723_v32, 16 }
  0x6d   : > { %5229 = vmatpush3.bf16.msra.mxu1 %v6074_v10  ;;  %v434_v10 = vsel %vm406_vm0, %v429_v58, %v433_v1  ;;  %v1898_v26 = vsel %vm1863_vm1, %v1888_v57, %v1897_v13  ;;  %v6700_v58 = vld [vmem:[%s6605_s25 + $0x38] sm:$0xff]   ;;  %v461_v63 = vor.u32 %v459_v59, %v457_v48  ;;  %v6749_v59 = vld [vmem:[%s6605_s25 + $0x60] sm:$0xff]  }
  0x6e   : > { %5437 = vmatpush3.bf16.msra.mxu0 %v6075_v11  ;;  %5230 = vmatprep.subr.bf16.mxu1 %v6076_v17  ;;  %v1902_v11 = vrot.slane %v1900_v4, 1  ;;  %v463_v0 = vshll.u32 %v6700_v58, 16 }
  0x6f   : > { %5438 = vmatprep.subr.bf16.mxu0 %v6077_v19 }
  0x70   : > { %v465_v8 = vrot.slane %v463_v0, 1  ;;  %v2338_v0 = vrot.slane %v6645_v38, 2 }
  0x71   : > { %5231 = vmatpush3.bf16.msra.mxu1 %v6076_v17  ;;  %v1905_v17 = vrot.slane %v1903_v9, 2 }
  0x72   : > { %5439 = vmatpush3.bf16.msra.mxu0 %v6077_v19  ;;  %5232 = vmatprep.subr.bf16.mxu1 %v6078_v34  ;;  %v437_v19 = vor.u32 %v435_v2, %v433_v1  ;;  %v6708_v1 = vld [vmem:[%s6605_s25 + $0x40] sm:$0xff]   ;;  %v467_v2 = vshrl.u32 %v6700_v58, 16 }
  0x73   : > { %5440 = vmatprep.subr.bf16.mxu0 %v6079_v39  ;;  %v1906_v27 = vor.u32 %v1905_v17, %v1902_v11  ;;  %v471_v9 = vshll.u32 %v6708_v1, 16  ;;  %v1939_v11 = vshll.u32 %v6712_v3, 16  ;;  %v6108_v17 = vld [vmem:[#allocation5 + $0x18] sm:$0xff]   ;;  %v475_v33 = vshrl.u32 %v6708_v1, 16 }
  0x74   : > { %v442_v36 = vsel %vm406_vm0, %v437_v19, %v441_v16  ;;  %v466_v19 = vsel %vm406_vm0, %v461_v63, %v465_v8 }
  0x75   : > { %5233 = vmatpush3.bf16.msra.mxu1 %v6078_v34  ;;  %v451_v34 = vshrl.u32 %v6675_v21, 16  ;;  %v1907_v37 = vsel %vm1863_vm1, %v1897_v13, %v1906_v27  ;;  %v1916_v55 = vsel %vm1863_vm1, %v1906_v27, %v1915_v47  ;;  %v473_v27 = vrot.slane %v471_v9, 1 }
  0x76   : > { %5441 = vmatpush3.bf16.msra.mxu0 %v6079_v39  ;;  %5270 = vmatprep.subr.bf16.mxu1 %v6085_v49  ;;  %v449_v39 = vrot.slane %v447_v30, 1  ;;  %v6107_v30 = vld [vmem:[#allocation5 + $0x170] sm:$0xff]   ;;  %v503_v9 = vshll.u32 %v6749_v59, 16 }
  0x77   : > { %5478 = vmatprep.subr.bf16.mxu0 %v6087_v52  ;;  %v477_v42 = vor.u32 %v475_v33, %v473_v27  ;;  %v6769_v33 = vld [vmem:[%s6605_s25 + $0x78] sm:$0xff]  }
  0x78   : > { %5235 = vmatmul.mubr.bf16.vlgmr.msra.gmra.mrb[0].mxu1 %v426_v62  ;;  %v450_v46 = vsel %vm406_vm0, %v445_v29, %v449_v39  ;;  %v6704_v62 = vld [vmem:[%s6605_s25 + $0x40] sm:$0xff]   ;;  %v1941_v29 = vrot.slane %v1939_v11, 2  ;;  %v6121_v11 = vld [vmem:[#allocation5 + $0x30] sm:$0xff]  }
  0x79   : > { %5443 = vmatmul.mubr.bf16.vlgmr.msra.gmra.mrb[0].mxu0 %v1889_v5  ;;  %5271 = vmatpush3.bf16.msra.mxu1 %v6085_v49  ;;  %v1920_v49 = vrot.slane %v1918_v43, 1  ;;  %v1930_v7 = vshll.u32 %v6704_v62, 16  ;;  %v479_v43 = vshll.u32 %v6723_v32, 16 }
  0x7a   : > { %5479 = vmatpush3.bf16.msra.mxu0 %v6087_v52  ;;  %5238 = vmatprep.mubr.bf16.mxu1 %v434_v10  ;;  %v453_v52 = vor.u32 %v451_v34, %v449_v39  ;;  %v1936_v10 = vshrl.u32 %v6712_v3, 16  ;;  %v2313_v34 = vld [vmem:[%s6605_s25 + $0x8] sm:$0xc] }
  0x7b   : > { %5480 = vmatprep.subr.bf16.mxu0 %v6088_v6  ;;  %5446 = vmatprep.mubr.bf16.mxu0 %v1898_v26  ;;  %v1924_v57 = vor.u32 %v1923_v50, %v1920_v49  ;;  %v1932_v16 = vrot.slane %v1930_v7, 2  ;;  %v469_v26 = vor.u32 %v467_v2, %v465_v8  ;;  %v4746_v39 = vcombine.low %v2313_v34, %v6624_v18  ;;  %v6740_v49 = vld [vmem:[%s6605_s25 + $0x58] sm:$0xff]   ;;  %v6116_v2 = vld [vmem:[#allocation5 + $0x180] sm:$0xff]  }
  0x7c   : > { %5272 = vmatprep.subr.bf16.mxu1 %v6094_v12  ;;  %v458_v4 = vsel %vm406_vm0, %v453_v52, %v457_v48  ;;  %v6113_v48 = vld [vmem:[#allocation5 + $0x20] sm:$0xff]   ;;  %v481_v24 = vrot.slane %v479_v43, 1  ;;  %v491_v50 = vshrl.u32 %v6733_v41, 16  ;;  %v2340_v7 = vrot.slane %v6656_v56, 2  ;;  %v6124_v34 = vld [vmem:[#allocation5 + $0x190] sm:$0xff]  }
  0x7d   : > { %5273 = vmatpush3.bf16.msra.mxu1 %v6094_v12  ;;  %v1925_v5 = vsel %vm1863_vm1, %v1915_v47, %v1924_v57  ;;  %v6102_v12 = vld [vmem:[#allocation5 + $0x168] sm:$0xff]   ;;  %v487_v47 = vshll.u32 %v6733_v41, 16  ;;  %v499_v38 = vshrl.u32 %v6740_v49, 16 }
  0x7e   : > { %5481 = vmatpush3.bf16.msra.mxu0 %v6088_v6  ;;  %5274 = vmatprep.subr.bf16.mxu1 %v6101_v51  ;;  %v1927_v6 = vshrl.u32 %v6704_v62, 16  ;;  %v485_v63 = vor.u32 %v483_v44, %v481_v24  ;;  %v6754_v8 = vld [vmem:[%s6605_s25 + $0x68] sm:$0xff]  }
  0x7f   : > { %5482 = vmatprep.subr.bf16.mxu0 %v6093_v20  ;;  %v511_v56 = vshll.u32 %v6754_v8, 16  ;;  %v515_v43 = vshrl.u32 %v6754_v8, 16 }
  0x80   : > { %5239 = vmatmul.mubr.bf16.gmra.mrb[4].mxu1 %v442_v36  ;;  %v1929_v13 = vrot.slane %v1927_v6, 1  ;;  %v6117_v6 = vld [vmem:[#allocation5 + $0x28] sm:$0xff]  }
  0x81   : > { %5447 = vmatmul.mubr.bf16.gmra.mrb[4].mxu0 %v1907_v37  ;;  %5242 = vmatprep.mubr.bf16.mxu1 %v450_v46  ;;  %v2335_v46 = vrot.slane %v4746_v39, 2  ;;  %v6126_v39 = vld [vmem:[#allocation5 + $0x38] sm:$0xff]  }
  0x82   : > { %5483 = vmatpush3.bf16.msra.mxu0 %v6093_v20  ;;  %5450 = vmatprep.mubr.bf16.mxu0 %v1916_v55  ;;  %v1938_v20 = vrot.slane %v1936_v10, 1  ;;  %v1933_v22 = vor.u32 %v1932_v16, %v1929_v13  ;;  %v482_v55 = vsel %vm406_vm0, %v477_v42, %v481_v24  ;;  %v507_v16 = vshrl.u32 %v6749_v59, 16 }
  0x83   : > { %5484 = vmatprep.subr.bf16.mxu0 %v6095_v45  ;;  %5275 = vmatpush3.bf16.msra.mxu1 %v6101_v51  ;;  %v6109_v51 = vld [vmem:[#allocation5 + $0x178] sm:$0xff]   ;;  %v2337_v52 = vsel %vm2334_vm2, %v2335_v46, %v2336_v40 }
  0x84   : > { %5276 = vmatprep.subr.bf16.mxu1 %v6108_v17  ;;  %v1934_v36 = vsel %vm1863_vm1, %v1924_v57, %v1933_v22  ;;  %v6728_v37 = vor.u32 %v1941_v29, %v1938_v20  ;;  %v489_v57 = vrot.slane %v487_v47, 1  ;;  %v505_v20 = vrot.slane %v503_v9, 1  ;;  %v6781_v47 = vld [vmem:[%s6605_s25 + $0x80] sm:$0xff]   ;;  %v6127_v9 = vld [vmem:[%s6605_s25 + $0x50] sm:$0xff]  }
  0x86   : > { %5485 = vmatpush3.bf16.msra.mxu0 %v6095_v45  ;;  %v474_v45 = vsel %vm406_vm0, %v469_v26, %v473_v27  ;;  %v1943_v18 = vsel %vm1863_vm1, %v1933_v22, %v6728_v37  ;;  %v490_v10 = vsel %vm406_vm0, %v485_v63, %v489_v57  ;;  %v6765_v22 = vld [vmem:[%s6605_s25 + $0x70] sm:$0xff]   ;;  %v2342_v27 = vrot.slane %v6663_v61, 2 }
  0x87   : > { %5486 = vmatprep.subr.bf16.mxu0 %v6100_v54  ;;  %5277 = vmatpush3.bf16.msra.mxu1 %v6108_v17  ;;  %v2341_v17 = vsel %vm2334_vm2, %v2338_v0, %v2340_v7  ;;  %v509_v29 = vor.u32 %v507_v16, %v505_v20  ;;  %v535_v63 = vshll.u32 %v6781_v47, 16 }
  0x88   : > { %5243 = vmatmul.mubr.bf16.gmra.mrb[8].mxu1 %v458_v4  ;;  %5278 = vmatprep.subr.bf16.mxu1 %v6113_v48  ;;  %v493_v4 = vor.u32 %v491_v50, %v489_v57  ;;  %v2343_v61 = vsel %vm2334_vm2, %v2340_v7, %v2342_v27  ;;  %v2346_v50 = vrot.slane %v6690_v35, 2  ;;  %v2348_v57 = vrot.slane %v6704_v62, 2 }
  0x89   : > { %5451 = vmatmul.mubr.bf16.gmra.mrb[8].mxu0 %v1925_v5  ;;  %5246 = vmatprep.mubr.bf16.mxu1 %v466_v19  ;;  %v6120_v19 = vld [vmem:[#allocation5 + $0x188] sm:$0xff]  }
  0x8a   : > { %5487 = vmatpush3.bf16.msra.mxu0 %v6100_v54  ;;  %5454 = vmatprep.mubr.bf16.mxu0 %v1934_v36  ;;  %v495_v54 = vshll.u32 %v6740_v49, 16  ;;  %v2344_v36 = vrot.slane %v6680_v28, 2  ;;  %v527_v28 = vshll.u32 %v6769_v33, 16  ;;  %v2349_v62 = vsel %vm2334_vm2, %v2346_v50, %v2348_v57 }
  0x8b   : > { %5488 = vmatprep.subr.bf16.mxu0 %v6102_v12  ;;  %5279 = vmatpush3.bf16.msra.mxu1 %v6113_v48 }
  0x8c   : > { %v497_v5 = vrot.slane %v495_v54, 1  ;;  %5280 = vmatprep.subr.bf16.mxu1 %v6117_v6  ;;  %v2345_v46 = vsel %vm2334_vm2, %v2342_v27, %v2344_v36  ;;  %v529_v54 = vrot.slane %v527_v28, 1 }
  0x8e   : > { %5489 = vmatpush3.bf16.msra.mxu0 %v6102_v12  ;;  %v2339_v12 = vsel %vm2334_vm2, %v2336_v40, %v2338_v0  ;;  %v498_v13 = vsel %vm406_vm0, %v493_v4, %v497_v5  ;;  %v501_v26 = vor.u32 %v499_v38, %v497_v5  ;;  %v519_v40 = vshll.u32 %v6765_v22, 16  ;;  %v6134_v0 = vld [vmem:[#allocation5 + $0x1a0] sm:$0xff]  }
  0x8f   : > { %5490 = vmatprep.subr.bf16.mxu0 %v6107_v30  ;;  %5281 = vmatpush3.bf16.msra.mxu1 %v6117_v6  ;;  %v2347_v4 = vsel %vm2334_vm2, %v2344_v36, %v2346_v50  ;;  %v539_v6 = vshrl.u32 %v6781_v47, 16  ;;  %v537_v38 = vrot.slane %v535_v63, 1  ;;  %v6131_v36 = vld [vmem:[%s6605_s25 + $0x60] sm:$0xff]  }
  0x90   : > { %5247 = vmatmul.mubr.bf16.gmra.mrb[12].mxu1 %v474_v45  ;;  %5282 = vmatprep.subr.bf16.mxu1 %v6121_v11  ;;  %v506_v42 = vsel %vm406_vm0, %v501_v26, %v505_v20  ;;  %v523_v45 = vshrl.u32 %v6765_v22, 16  ;;  %v521_v48 = vrot.slane %v519_v40, 1 }
  0x91   : > { %5455 = vmatmul.mubr.bf16.gmra.mrb[12].mxu0 %v1943_v18  ;;  %5250 = vmatprep.mubr.bf16.mxu1 %v482_v55  ;;  %v6130_v18 = vld [vmem:[#allocation5 + $0x198] sm:$0xff]   ;;  %v6787_v55 = vld [vmem:[#allocation5 + $0x80] sm:$0xff]   ;;  %v541_v16 = vor.u32 %v539_v6, %v537_v38  ;;  %v6143_v6 = vld [vmem:[%s6605_s25 + $0x90] sm:$0xff]  }
  0x92   : > { %5491 = vmatpush3.bf16.msra.mxu0 %v6107_v30  ;;  %5494 = vmatprep.mubr.bf16.mxu0 %v2337_v52  ;;  %v513_v30 = vrot.slane %v511_v56, 1  ;;  %v525_v52 = vor.u32 %v523_v45, %v521_v48  ;;  %v6133_v45 = vld [vmem:[%s6605_s25 + $0x68] sm:$0xff]  }
  0x93   : > { %5492 = vmatprep.subr.bf16.mxu0 %v6109_v51  ;;  %5283 = vmatpush3.bf16.msra.mxu1 %v6121_v11  ;;  %v6138_v11 = vld [vmem:[#allocation5 + $0x1a8] sm:$0xff]  }
  0x94   : > { %5284 = vmatprep.subr.bf16.mxu1 %v6126_v39  ;;  %v514_v44 = vsel %vm406_vm0, %v509_v29, %v513_v30  ;;  %v517_v24 = vor.u32 %v515_v43, %v513_v30  ;;  %v530_v5 = vsel %vm406_vm0, %v525_v52, %v529_v54  ;;  %v6136_v52 = vld [vmem:[%s6605_s25 + $0x78] sm:$0xff]  }
  0x96   : > { %5493 = vmatpush3.bf16.msra.mxu0 %v6109_v51  ;;  %v6785_v51 = vld [vmem:[%s6605_s25 + $0x88] sm:$0xff]   ;;  %v522_v35 = vsel %vm406_vm0, %v517_v24, %v521_v48  ;;  %v2358_v24 = vrot.slane %v6133_v45, 2 }
  0x97   : > { %5530 = vmatprep.subr.bf16.mxu0 %v6116_v2  ;;  %5285 = vmatpush3.bf16.msra.mxu1 %v6126_v39  ;;  %v543_v7 = vshll.u32 %v6785_v51, 16  ;;  %v547_v26 = vshrl.u32 %v6785_v51, 16  ;;  %v6146_v39 = vld [vmem:[#allocation5 + $0x1b8] sm:$0xff]   ;;  %v6879_v45 = vld [vmem:[%s6605_s25 + $0x48] sm:$0xff]  }
  0x98   : > { %5251 = vmatmul.mubr.bf16.gmra.mrb[16].mxu1 %v490_v10  ;;  %5322 = vmatprep.subr.bf16.mxu1 %v6787_v55  ;;  %v6128_v10 = vld [vmem:[%s6605_s25 + $0x90] ss:$0 sps:$4 sm:$0x11]  }
  0x99   : > { %5495 = vmatmul.mubr.bf16.vlgmr.msra.gmra.mrb[0].mxu0 %v2339_v12  ;;  %5254 = vmatprep.mubr.bf16.mxu1 %v498_v13  ;;  %v2350_v13 = vrot.slane %v6712_v3, 2  ;;  %v545_v56 = vrot.slane %v543_v7, 1  ;;  %v551_v27 = vshll.u32 %v6128_v10, 16  ;;  %v2651_v7 = vld [vmem:[%s6605_s25 + $0x10] sm:$0xc] }
  0x9a   : > { %5498 = vmatprep.mubr.bf16.mxu0 %v2341_v17  ;;  %5531 = vmatpush3.bf16.msra.mxu0 %v6116_v2  ;;  %v531_v2 = vshrl.u32 %v6769_v33, 16  ;;  %v2352_v17 = vrot.slane %v6127_v9, 2  ;;  %v6150_v9 = vld [vmem:[#allocation5 + $0xa0] sm:$0xff]   ;;  %v6144_v10 = vld [vmem:[%s6605_s25 + $0x98] ss:$0 sps:$4 sm:$0x33]  }
  0x9b   : > { %5532 = vmatprep.subr.bf16.mxu0 %v6120_v19  ;;  %v2351_v29 = vsel %vm2334_vm2, %v2348_v57, %v2350_v13  ;;  %v546_v30 = vsel %vm406_vm0, %v541_v16, %v545_v56  ;;  %v549_v40 = vor.u32 %v547_v26, %v545_v56  ;;  %v6137_v57 = vld [vmem:[#allocation5 + $0x88] sm:$0xff]   ;;  %v2370_v16 = vrot.slane %v6144_v10, 2  ;;  %v6847_v26 = vld [vmem:[%s6605_s25 + $0x20] sm:$0xff]   ;;  %v6921_v10 = vld [vmem:[%s6605_s25 + $0x78] sm:$0xff]  }
  0x9c   : > { %v533_v12 = vor.u32 %v531_v2, %v529_v54  ;;  %v2353_v3 = vsel %vm2334_vm2, %v2350_v13, %v2352_v17 }
  0x9e   : > { %5533 = vmatpush3.bf16.msra.mxu0 %v6120_v19  ;;  %v6142_v19 = vld [vmem:[#allocation5 + $0x1b0] sm:$0xff]   ;;  %v538_v20 = vsel %vm406_vm0, %v533_v12, %v537_v38 }
  0x9f   : > { %5534 = vmatprep.subr.bf16.mxu0 %v6124_v34  ;;  %v2652_v38 = vld [vmem:[%s6605_s25 + $0x14] sm:$0xf]  ;;  %v6836_v12 = vld [vmem:[%s6605_s25 + $0x18] sm:$0xff]  }
  0xa0   : > { %5255 = vmatmul.mubr.bf16.gmra.mrb[20].mxu1 %v506_v42  ;;  %v553_v42 = vrot.slane %v551_v27, 1  ;;  %v6839_v13 = vcombine.low %v2651_v7, %v2652_v38  ;;  %v6850_v27 = vld [vmem:[%s6605_s25 + $0x28] sm:$0xff]   ;;  %v6200_v38 = vld [vmem:[%s6605_s25 + $0x10] sm:$0xff]  }
  0xa1   : > { %5499 = vmatmul.mubr.bf16.gmra.mrb[4].mxu0 %v2343_v61  ;;  %5258 = vmatprep.mubr.bf16.mxu1 %v514_v44  ;;  %v2356_v61 = vrot.slane %v6131_v36, 2  ;;  %v6912_v7 = vld [vmem:[#allocation5 + $0x200] sm:$0xff]  }
  0xa2   : > { %5502 = vmatprep.mubr.bf16.mxu0 %v2345_v46  ;;  %5535 = vmatpush3.bf16.msra.mxu0 %v6124_v34  ;;  %v6129_v34 = vld [vmem:[%s6605_s25 + $0x58] sm:$0xff]   ;;  %v554_v44 = vsel %vm406_vm0, %v549_v40, %v553_v42  ;;  %v6135_v46 = vld [vmem:[%s6605_s25 + $0x70] sm:$0xff]   ;;  %v2798_v56 = vrot.slane %v6839_v13, 2 }
  0xa3   : > { %5536 = vmatprep.subr.bf16.mxu0 %v6130_v18  ;;  %v2354_v43 = vrot.slane %v6129_v34, 2  ;;  %v2360_v50 = vrot.slane %v6135_v46, 2  ;;  %v2359_v54 = vsel %vm2334_vm2, %v2356_v61, %v2358_v24  ;;  %v6857_v34 = vld [vmem:[#allocation5 + $0xc0] sm:$0xff]   ;;  %v2811_v46 = vrot.slane %v6879_v45, 2 }
  0xa5   : > { %v2355_v28 = vsel %vm2334_vm2, %v2352_v17, %v2354_v43  ;;  %v2357_v48 = vsel %vm2334_vm2, %v2354_v43, %v2356_v61  ;;  %v2361_v63 = vsel %vm2334_vm2, %v2358_v24, %v2360_v50  ;;  %v2799_v17 = vrot.slane %v6836_v12, 2  ;;  %v6161_v43 = vld [vmem:[#allocation5 + $0x1d0] sm:$0xff]  }
  0xa6   : > { %5537 = vmatpush3.bf16.msra.mxu0 %v6130_v18  ;;  %v6814_v18 = vld [vmem:[#allocation5 + $0x1c0] sm:$0xff]   ;;  %v6887_v24 = vld [vmem:[%s6605_s25 + $0x50] sm:$0xff]  }
  0xa7   : > { %5538 = vmatprep.subr.bf16.mxu0 %v6134_v0 }
  0xa8   : > { %5259 = vmatmul.mubr.bf16.gmra.mrb[24].mxu1 %v522_v35  ;;  %v6141_v35 = vld [vmem:[#allocation5 + $0x90] sm:$0xff]  }
  0xa9   : > { %5503 = vmatmul.mubr.bf16.gmra.mrb[8].mxu0 %v2347_v4  ;;  %5262 = vmatprep.mubr.bf16.mxu1 %v530_v5  ;;  %v6140_v4 = vld [vmem:[%s6605_s25 + $0x88] sm:$0xff]  }
  0xaa   : > { %5506 = vmatprep.mubr.bf16.mxu0 %v2349_v62  ;;  %5539 = vmatpush3.bf16.msra.mxu0 %v6134_v0  ;;  %v6139_v0 = vld [vmem:[%s6605_s25 + $0x80] sm:$0xff]   ;;  %v2368_v62 = vrot.slane %v6143_v6, 2 }
  0xab   : > { %5540 = vmatprep.subr.bf16.mxu0 %v6138_v11  ;;  %v2364_v2 = vrot.slane %v6139_v0, 2 }
  0xae   : > { %5541 = vmatpush3.bf16.msra.mxu0 %v6138_v11 }
  0xaf   : > { %5542 = vmatprep.subr.bf16.mxu0 %v6142_v19 }
  0xb0   : > { %5263 = vmatmul.mubr.bf16.gmra.mrb[28].mxu1 %v538_v20  ;;  %v2371_v20 = vsel %vm2334_vm2, %v2368_v62, %v2370_v16 }
  0xb1   : > { %5507 = vmatmul.mubr.bf16.gmra.mrb[12].mxu0 %v2351_v29  ;;  %5266 = vmatprep.mubr.bf16.mxu1 %v546_v30  ;;  %v2801_v29 = vrot.slane %v6847_v26, 2  ;;  %v2803_v30 = vrot.slane %v6850_v27, 2 }
  0xb2   : > { %5510 = vmatprep.mubr.bf16.mxu0 %v2353_v3  ;;  %5543 = vmatpush3.bf16.msra.mxu0 %v6142_v19  ;;  %v6158_v19 = vld [vmem:[#allocation5 + $0xb0] sm:$0xff]  }
  0xb3   : > { %5544 = vmatprep.subr.bf16.mxu0 %v6146_v39  ;;  %v2802_v36 = vsel %vm2334_vm2, %v2799_v17, %v2801_v29  ;;  %v6861_v3 = vld [vmem:[%s6605_s25 + $0x30] sm:$0xff]  }
  0xb4   : > { %v2805_v40 = vrot.slane %v6861_v3, 2 }
  0xb6   : > { %5545 = vmatpush3.bf16.msra.mxu0 %v6146_v39  ;;  %v6864_v39 = vld [vmem:[%s6605_s25 + $0x38] sm:$0xff]   ;;  %v2806_v61 = vsel %vm2334_vm2, %v2803_v30, %v2805_v40 }
  0xb7   : > { %5582 = vmatprep.subr.bf16.mxu0 %v6814_v18  ;;  %v2807_v42 = vrot.slane %v6864_v39, 2 }
  0xb8   : > { %5267 = vmatmul.mubr.bf16.gmra.mrb[32].mxu1 %v554_v44  ;;  %v6875_v44 = vld [vmem:[%s6605_s25 + $0x40] sm:$0xff]  }
  0xb9   : > { %5511 = vmatmul.mubr.bf16.gmra.mrb[16].mxu0 %v2355_v28  ;;  %5286 = vmatprep.mubr.bf16.mxu1 %v6617_v14  ;;  %v2362_v14 = vrot.slane %v6136_v52, 2  ;;  %v2809_v28 = vrot.slane %v6875_v44, 2  ;;  %v2813_v52 = vrot.slane %v6887_v24, 2 }
  0xba   : > { %5514 = vmatprep.mubr.bf16.mxu0 %v2357_v48  ;;  %v6170_v48 = vld [vmem:[#allocation5 + $0x1e0] sm:$0xff]  }
  0xbb   : > { %v2363_v5 = vsel %vm2334_vm2, %v2360_v50, %v2362_v14  ;;  %v6891_v50 = vld [vmem:[%s6605_s25 + $0x58] sm:$0xff]   ;;  %v2814_v0 = vsel %vm2334_vm2, %v2811_v46, %v2813_v52 }
  0xc0   : > { %5287 = vmatmul.mubr.bf16.vlgmr.msra.gmra.mrb[0].mxu1 %v6620_v15  ;;  %v6145_v15 = vld [vmem:[#allocation5 + $0x98] sm:$0xff]  }
  0xc1   : > { %5515 = vmatmul.mubr.bf16.gmra.mrb[20].mxu0 %v2359_v54  ;;  %5323 = vmatpush3.bf16.msra.mxu1 %v6787_v55  ;;  %v2365_v55 = vsel %vm2334_vm2, %v2362_v14, %v2364_v2  ;;  %v2815_v54 = vrot.slane %v6891_v50, 2  ;;  %v6900_v14 = vld [vmem:[%s6605_s25 + $0x60] sm:$0xff]  }
  0xc2   : > { %5290 = vmatprep.mubr.bf16.mxu1 %v6636_v25  ;;  %5518 = vmatprep.mubr.bf16.mxu0 %v2361_v63  ;;  %v2366_v25 = vrot.slane %v6140_v4, 2  ;;  %v6178_v63 = vld [vmem:[#allocation5 + $0x1f0] sm:$0xff]   ;;  %v6182_v4 = vld [vmem:[#allocation5 + $0x1f8] sm:$0xff]  }
  0xc3   : > { %5324 = vmatprep.subr.bf16.mxu1 %v6137_v57 }
  0xc4   : > { %v2367_v11 = vsel %vm2334_vm2, %v2364_v2, %v2366_v25  ;;  %v2816_v2 = vsel %vm2334_vm2, %v2813_v52, %v2815_v54  ;;  %v6962_v52 = vld [vmem:[%s6605_s25 + $0x90] sm:$0xff]  }
  0xc5   : > { %5325 = vmatpush3.bf16.msra.mxu1 %v6137_v57  ;;  %v1041_v57 = vld [vmem:[%s6605_s25] sm:$0xe] }
  0xc6   : > { %5326 = vmatprep.subr.bf16.mxu1 %v6141_v35 }
  0xc8   : > { %5291 = vmatmul.mubr.bf16.gmra.mrb[4].mxu1 %v6651_v53  ;;  %v2369_v53 = vsel %vm2334_vm2, %v2366_v25, %v2368_v62  ;;  %v6917_v62 = vld [vmem:[%s6605_s25 + $0x70] sm:$0xff]  }
  0xc9   : > { %5519 = vmatmul.mubr.bf16.gmra.mrb[24].mxu0 %v2363_v5  ;;  %5294 = vmatprep.mubr.bf16.mxu1 %v6660_v60  ;;  %v6154_v60 = vld [vmem:[#allocation5 + $0xa8] sm:$0xff]   ;;  %v2817_v5 = vrot.slane %v6900_v14, 2 }
  0xca   : > { %5522 = vmatprep.mubr.bf16.mxu0 %v2365_v55  ;;  %5327 = vmatpush3.bf16.msra.mxu1 %v6141_v35  ;;  %v6198_v35 = vld [vmem:[%s6605_s25 + $0x4] sm:$0xf] }
  0xcb   : > { %5328 = vmatprep.subr.bf16.mxu1 %v6145_v15 }
  0xce   : > { %5329 = vmatpush3.bf16.msra.mxu1 %v6145_v15  ;;  %v6199_v15 = vld [vmem:[%s6605_s25 + $0x8] sm:$0xff]  }
  0xcf   : > { %5330 = vmatprep.subr.bf16.mxu1 %v6150_v9  ;;  %v1064_v55 = vrot.slane %v6199_v15, 1  ;;  %v3137_v15 = vshrl.u32 %v6839_v13, 16 }
  0xd0   : > { %5295 = vmatmul.mubr.bf16.gmra.mrb[8].mxu1 %v6675_v21  ;;  %v2800_v21 = vsel %vm2334_vm2, %v2798_v56, %v2799_v17  ;;  %v2823_v56 = vrot.slane %v6921_v10, 2  ;;  %v6426_v17 = vmov 0  }
  0xd1   : > { %5523 = vmatmul.mubr.bf16.gmra.mrb[28].mxu0 %v2367_v11  ;;  %5298 = vmatprep.mubr.bf16.mxu1 %v6684_v31  ;;  %v6162_v31 = vld [vmem:[#allocation5 + $0xb8] sm:$0xff]   ;;  %v1066_v11 = vrot.slane %v6200_v38, 1  ;;  %v2829_v38 = vrot.slane %v6962_v52, 2 }
  0xd2   : > { %5526 = vmatprep.mubr.bf16.mxu0 %v2369_v53  ;;  %5331 = vmatpush3.bf16.msra.mxu1 %v6150_v9  ;;  %v2821_v53 = vrot.slane %v6917_v62, 2 }
  0xd3   : > { %5332 = vmatprep.subr.bf16.mxu1 %v6154_v60  ;;  %6062 = vset.pattern.permute.xlu0 %v6426_v17 }
  0xd4   : > { %6063 = vset.pattern.permute.xlu1 %v6426_v17 }
  0xd6   : > { %5333 = vmatpush3.bf16.msra.mxu1 %v6154_v60  ;;  %v6201_v60 = vld [vmem:[%s6605_s25 + $0x18] sm:$0xff]  }
  0xd7   : > { %5334 = vmatprep.subr.bf16.mxu1 %v6158_v19  ;;  %v1068_v16 = vrot.slane %v6201_v60, 1 }
  0xd8   : > { %5299 = vmatmul.mubr.bf16.gmra.mrb[12].mxu1 %v6700_v58  ;;  %v2804_v58 = vsel %vm2334_vm2, %v2801_v29, %v2803_v30  ;;  %v2824_v29 = vsel %vm2334_vm2, %v2821_v53, %v2823_v56  ;;  %v6173_v30 = vld [vmem:[#allocation5 + $0xc8] sm:$0xff]  }
  0xd9   : > { %5527 = vmatmul.mubr.bf16.gmra.mrb[32].mxu0 %v2371_v20  ;;  %5302 = vmatprep.mubr.bf16.mxu1 %v6708_v1  ;;  %v6157_v1 = vld [vmem:[#allocation5 + $0x1c8] sm:$0xff]   ;;  %v6934_v20 = vld [vmem:[%s6605_s25 + $0x80] sm:$0xff]  }
  0xda   : > { %5546 = vmatprep.mubr.bf16.mxu0 %v2800_v21  ;;  %5335 = vmatpush3.bf16.msra.mxu1 %v6158_v19  ;;  %v4103_v21 = vld [vmem:[%s7603_s2] sm:$0xff] }
  0xdb   : > { %5336 = vmatprep.subr.bf16.mxu1 %v6162_v31  ;;  %vm4139_vm4 = vcmp.gt.f32.partialorder %v4103_v21, 0.0 }
  0xde   : > { %5337 = vmatpush3.bf16.msra.mxu1 %v6162_v31  ;;  %v1069_v31 = vsel %vm1062_vm3, %v1066_v11, %v1068_v16 }
  0xdf   : > { %5374 = vmatprep.subr.bf16.mxu1 %v6857_v34 }
  0xe0   : > { %5303 = vmatmul.mubr.bf16.gmra.mrb[16].mxu1 %v6723_v32  ;;  %v2808_v32 = vsel %vm2334_vm2, %v2805_v40, %v2807_v42 }
  0xe1   : > { %5547 = vmatmul.mubr.bf16.vlgmr.msra.gmra.mrb[0].mxu0 %v2802_v36  ;;  %5306 = vmatprep.mubr.bf16.mxu1 %v6733_v41  ;;  %v6165_v41 = vld [vmem:[#allocation5 + $0x1d8] sm:$0xff]   ;;  %v6942_v36 = vld [vmem:[%s6605_s25 + $0x88] sm:$0xff]  }
  0xe2   : > { %5550 = vmatprep.mubr.bf16.mxu0 %v2804_v58  ;;  %5583 = vmatpush3.bf16.msra.mxu0 %v6814_v18  ;;  %v2810_v18 = vsel %vm2334_vm2, %v2807_v42, %v2809_v28  ;;  %v4175_v58 = vsel %vm4139_vm4, 1, %v6426_v17  ;;  %v4105_v42 = vld [vmem:[%s7603_s2 + $0x10] sm:$0xff] }
  0xe3   : > { %5584 = vmatprep.subr.bf16.mxu0 %v6157_v1  ;;  %vm4141_vm5 = vcmp.gt.f32.partialorder %v4105_v42, 0.0  ;;  %4212 = vperm.xlu0 %6062, %v4175_v58   ;;  %v4110_v58 = vld [vmem:[%s7603_s2 + $0x38] sm:$0xff]  ;;  %v6185_v42 = vld [vmem:[#allocation5 + $0xe8] sm:$0xff]  }
  0xe4   : > { %vm4146_vm11 = vcmp.gt.f32.partialorder %v4110_v58, 0.0 }
  0xe6   : > { %5585 = vmatpush3.bf16.msra.mxu0 %v6157_v1  ;;  %v6202_v1 = vld [vmem:[%s6605_s25 + $0x20] sm:$0xff]  }
  0xe7   : > { %5586 = vmatprep.subr.bf16.mxu0 %v6161_v43  ;;  %v1070_v40 = vrot.slane %v6202_v1, 1  ;;  %v4111_v1 = vld [vmem:[%s7603_s2 + $0x40] sm:$0xff] }
  0xe8   : > { %5307 = vmatmul.mubr.bf16.gmra.mrb[20].mxu1 %v6740_v49  ;;  %v2812_v49 = vsel %vm2334_vm2, %v2809_v28, %v2811_v46  ;;  %v6177_v28 = vld [vmem:[#allocation5 + $0xd0] sm:$0xff]   ;;  %v4177_v46 = vsel %vm4141_vm5, 1, %v6426_v17  ;;  %vm4147_vm12 = vcmp.gt.f32.partialorder %v4111_v1, 0.0 }
  0xe9   : > { %5551 = vmatmul.mubr.bf16.gmra.mrb[4].mxu0 %v2806_v61  ;;  %5310 = vmatprep.mubr.bf16.mxu1 %v6749_v59  ;;  %v6174_v59 = vld [vmem:[#allocation5 + $0x1e8] sm:$0xff]   ;;  %v2825_v61 = vrot.slane %v6934_v20, 2 }
  0xea   : > { %5554 = vmatprep.mubr.bf16.mxu0 %v2808_v32  ;;  %5587 = vmatpush3.bf16.msra.mxu0 %v6161_v43  ;;  %v4104_v43 = vld [vmem:[%s7603_s2 + $0x8] sm:$0xff] }
  0xeb   : > { %5588 = vmatprep.subr.bf16.mxu0 %v6165_v41  ;;  %v6203_v32 = vld [vmem:[%s6605_s25 + $0x28] sm:$0xff]   ;;  %vm4140_vm6 = vcmp.gt.f32.partialorder %v4104_v43, 0.0  ;;  %4218 = vperm.xlu1 %6063, %v4177_v46   ;;  %v6206_v43 = vld [vmem:[%s6605_s25 + $0x40] sm:$0xff]   ;;  %v3154_v46 = vshrl.u32 %v6847_v26, 16 }
  0xee   : > { %5589 = vmatpush3.bf16.msra.mxu0 %v6165_v41  ;;  %v1072_v41 = vrot.slane %v6203_v32, 1  ;;  %v7010_v32 = vld [vmem:[%s6605_s25 + $0x48] sm:$0xff]  }
  0xef   : > { %5590 = vmatprep.subr.bf16.mxu0 %v6170_v48 }
  0xf0   : > { %5311 = vmatmul.mubr.bf16.gmra.mrb[24].mxu1 %v6754_v8  ;;  %v4701_v8 = vcombine.low %v1041_v57, %v6198_v35  ;;  %v4107_v57 = vld [vmem:[%s7603_s2 + $0x20] sm:$0xff] }
  0xf1   : > { %5555 = vmatmul.mubr.bf16.gmra.mrb[8].mxu0 %v2810_v18  ;;  %5314 = vmatprep.mubr.bf16.mxu1 %v6765_v22  ;;  %v6905_v22 = vld [vmem:[%s6605_s25 + $0x68] sm:$0xff]   ;;  %v1071_v18 = vsel %vm1062_vm3, %v1068_v16, %v1070_v40  ;;  %v6181_v35 = vld [vmem:[#allocation5 + $0xd8] sm:$0xff]   ;;  %vm4143_vm8 = vcmp.gt.f32.partialorder %v4107_v57, 0.0 }
  0xf2   : > { %5558 = vmatprep.mubr.bf16.mxu0 %v2812_v49  ;;  %5591 = vmatpush3.bf16.msra.mxu0 %v6170_v48  ;;  %v1063_v6 = vrot.slane %v4701_v8, 1  ;;  %v2819_v25 = vrot.slane %v6905_v22, 2  ;;  %v4176_v48 = vsel %vm4140_vm6, 1, %v6426_v17  ;;  %v2826_v49 = vsel %vm2334_vm2, %v2823_v56, %v2825_v61  ;;  %v6204_v8 = vld [vmem:[%s6605_s25 + $0x30] sm:$0xff]  }
  0xf3   : > { %5592 = vmatprep.subr.bf16.mxu0 %v6174_v59  ;;  %4215 = vperm.xlu0 %6062, %v4176_v48   ;;  %v3139_v56 = vrot.slane %v3137_v15, 2  ;;  %v3157_v48 = vshll.u32 %v6847_v26, 16  ;;  %v3166_v26 = vshll.u32 %v6850_v27, 16 }
  0xf4   : > { %v2820_v9 = vsel %vm2334_vm2, %v2817_v5, %v2819_v25  ;;  %v2822_v19 = vsel %vm2334_vm2, %v2819_v25, %v2821_v53  ;;  %v3145_v25 = vshrl.u32 %v6836_v12, 16  ;;  %v6183_v53 = vld [vmem:[#allocation5 + $0xe0] sm:$0xff]  }
  0xf5   : > { %v3159_v15 = vrot.slane %v3157_v48, 3  ;;  %v6186_v48 = vld [vmem:[#allocation5 + $0x208] sm:$0xff]  }
  0xf6   : > { %5593 = vmatpush3.bf16.msra.mxu0 %v6174_v59  ;;  %v1073_v59 = vsel %vm1062_vm3, %v1070_v40, %v1072_v41 }
  0xf7   : > { %5594 = vmatprep.subr.bf16.mxu0 %v6178_v63 }
  0xf8   : > { %5315 = vmatmul.mubr.bf16.gmra.mrb[28].mxu1 %v6769_v33  ;;  %v2818_v33 = vsel %vm2334_vm2, %v2815_v54, %v2817_v5  ;;  %v4106_v54 = vld [vmem:[%s7603_s2 + $0x18] sm:$0xff] }
  0xf9   : > { %5559 = vmatmul.mubr.bf16.gmra.mrb[12].mxu0 %v2814_v0  ;;  %5318 = vmatprep.mubr.bf16.mxu1 %v6781_v47  ;;  %v1065_v47 = vsel %vm1062_vm3, %v1063_v6, %v1064_v55  ;;  %v6972_v0 = vld [vmem:[%s6605_s25 + $0x98] sm:$0xff]   ;;  %vm4142_vm7 = vcmp.gt.f32.partialorder %v4106_v54, 0.0 }
  0xfa   : > { %5562 = vmatprep.mubr.bf16.mxu0 %v2816_v2  ;;  %5595 = vmatpush3.bf16.msra.mxu0 %v6178_v63  ;;  %v1074_v2 = vrot.slane %v6204_v8, 1  ;;  %v4178_v6 = vsel %vm4142_vm7, 1, %v6426_v17 }
  0xfb   : > { %5596 = vmatprep.subr.bf16.mxu0 %v6182_v4  ;;  %4221 = vperm.xlu1 %6063, %v4178_v6   ;;  %v3156_v6 = vrot.slane %v3154_v46, 2 }
  0xfc   : > { %v1075_v60 = vsel %vm1062_vm3, %v1072_v41, %v1074_v2  ;;  %v1080_v41 = vrot.slane %v7010_v32, 1  ;;  %v4118_v32 = vld [vmem:[%s7603_s2 + $0x78] sm:$0xff] }
  0xfd   : > { %vm4154_vm6 = vcmp.gt.f32.partialorder %v4118_v32, 0.0 }
  0xfe   : > { %5597 = vmatpush3.bf16.msra.mxu0 %v6182_v4  ;;  %v6976_v4 = vld [vmem:[%s6605_s25 + $0x38] sm:$0xff]  }
  0xff   : > { %5634 = vmatprep.subr.bf16.mxu0 %v6912_v7  ;;  %v1076_v5 = vrot.slane %v6976_v4, 1  ;;  %v4114_v4 = vld [vmem:[%s7603_s2 + $0x58] sm:$0xff] }
 0x100   : > { %5319 = vmatmul.mubr.bf16.gmra.mrb[32].mxu1 %v6785_v51  ;;  %v1067_v51 = vsel %vm1062_vm3, %v1064_v55, %v1066_v11  ;;  %v3140_v55 = vshll.u32 %v6839_v13, 16  ;;  %v3148_v11 = vshll.u32 %v6836_v12, 16  ;;  %v2831_v13 = vrot.slane %v6972_v0, 2 }
 0x101   : > { %5563 = vmatmul.mubr.bf16.gmra.mrb[16].mxu0 %v2818_v33  ;;  %5338 = vmatprep.mubr.bf16.mxu1 %v1065_v47  ;;  %v4179_v33 = vsel %vm4143_vm8, 1, %v6426_v17  ;;  %v4108_v47 = vld [vmem:[%s7603_s2 + $0x28] sm:$0xff]  ;;  %vm4150_vm0 = vcmp.gt.f32.partialorder %v4114_v4, 0.0  ;;  %v7101_v4 = vld [vmem:[%s6605_s25 + $0xa0] ss:$0 sps:$4 sm:$0x77]  }
 0x102   : > { %5566 = vmatprep.mubr.bf16.mxu0 %v2820_v9  ;;  %v4109_v9 = vld [vmem:[%s7603_s2 + $0x30] sm:$0xff]  ;;  %vm4144_vm9 = vcmp.gt.f32.partialorder %v4108_v47, 0.0  ;;  %4224 = vperm.xlu0 %6062, %v4179_v33   ;;  %v2832_v40 = vsel %vm2334_vm2, %v2829_v38, %v2831_v13 }
 0x103   : > { %vm4145_vm10 = vcmp.gt.f32.partialorder %v4109_v9, 0.0  ;;  %v4180_v16 = vsel %vm4144_vm9, 1, %v6426_v17  ;;  %v3168_v9 = vrot.slane %v3166_v26, 3 }
 0x104   : > { %v4181_v21 = vsel %vm4145_vm10, 1, %v6426_v17  ;;  %4227 = vperm.xlu1 %6063, %v4180_v16   ;;  %v4186_v16 = vsel %vm4150_vm0, 1, %v6426_v17  ;;  %vm3606_vm10 = vcmask 1044480  }
 0x106   : > { %4230 = vperm.xlu0 %6062, %v4181_v21  }
 0x108   : > { %5339 = vmatmul.mubr.bf16.vlgmr.msra.gmra.mrb[0].mxu1 %v1067_v51  ;;  %v3142_v51 = vrot.slane %v3140_v55, 3 }
 0x109   : > { %5567 = vmatmul.mubr.bf16.gmra.mrb[20].mxu0 %v2822_v19  ;;  %5375 = vmatpush3.bf16.msra.mxu1 %v6857_v34  ;;  %v2827_v34 = vrot.slane %v6942_v36, 2  ;;  %v3147_v19 = vrot.slane %v3145_v25, 2 }
 0x10a   : > { %5342 = vmatprep.mubr.bf16.mxu1 %v1069_v31  ;;  %5570 = vmatprep.mubr.bf16.mxu0 %v2824_v29  ;;  %v1077_v31 = vsel %vm1062_vm3, %v1074_v2, %v1076_v5  ;;  %v6180_v29 = vld [vmem:[%s6605_s25 + $0xa0] ss:$0 sps:$4 sm:$0x33]  }
 0x10b   : > { %5376 = vmatprep.subr.bf16.mxu1 %v6173_v30  ;;  %v2828_v63 = vsel %vm2334_vm2, %v2825_v61, %v2827_v34  ;;  %v2830_v12 = vsel %vm2334_vm2, %v2827_v34, %v2829_v38  ;;  %v1078_v61 = vrot.slane %v6206_v43, 1  ;;  %v3143_v34 = vor.u32 %v3142_v51, %v3139_v56  ;;  %v6189_v38 = vld [vmem:[#allocation5 + $0xf8] sm:$0xff]  }
 0x10c   : > { %v2833_v54 = vrot.slane %v6180_v29, 2  ;;  %v3160_v56 = vor.u32 %v3159_v15, %v3156_v6  ;;  %v3172_v51 = vshrl.u32 %v6861_v3, 16  ;;  %v3181_v29 = vshrl.u32 %v6864_v39, 16  ;;  %v4120_v6 = vld [vmem:[%s7603_s2 + $0x88] sm:$0xff]  ;;  %v4121_v15 = vld [vmem:[%s7603_s2 + $0x90] sm:$0xff] }
 0x10d   : > { %5377 = vmatpush3.bf16.msra.mxu1 %v6173_v30  ;;  %v3150_v30 = vrot.slane %v3148_v11, 3  ;;  %v1079_v2 = vsel %vm1062_vm3, %v1076_v5, %v1078_v61  ;;  %v4115_v5 = vld [vmem:[%s7603_s2 + $0x60] sm:$0xff]  ;;  %v6208_v11 = vld [vmem:[%s6605_s25 + $0x50] sm:$0xff]   ;;  %vm4156_vm8 = vcmp.gt.f32.partialorder %v4120_v6, 0.0  ;;  %vm4157_vm9 = vcmp.gt.f32.partialorder %v4121_v15, 0.0  ;;  %v4128_v6 = vld [vmem:[%s7603_s2 + $0xc8] sm:$0xff] }
 0x10e   : > { %5378 = vmatprep.subr.bf16.mxu1 %v6177_v28  ;;  %v2834_v25 = vsel %vm2334_vm2, %v2831_v13, %v2833_v54  ;;  %vm4151_vm2 = vcmp.gt.f32.partialorder %v4115_v5, 0.0  ;;  %v1082_v13 = vrot.slane %v6208_v11, 1  ;;  %v7079_v54 = vld [vmem:[%s6605_s25 + $0x68] sm:$0xff]   ;;  %v3640_v5 = vrot.slane %v6972_v0, 3 }
 0x10f   : > { %v3151_v57 = vor.u32 %v3150_v30, %v3147_v19  ;;  %v3175_v19 = vshll.u32 %v6861_v3, 16  ;;  %v4187_v21 = vsel %vm4151_vm2, 1, %v6426_v17  ;;  %v3184_v30 = vshll.u32 %v6864_v39, 16  ;;  %v4129_v15 = vld [vmem:[%s7603_s2 + $0xd0] sm:$0xff] }
 0x110   : > { %5343 = vmatmul.mubr.bf16.gmra.mrb[4].mxu1 %v1071_v18  ;;  %v4183_v18 = vsel %vm4147_vm12, 1, %v6426_v17  ;;  %v1083_v1 = vsel %vm1062_vm3, %v1080_v41, %v1082_v13 }
 0x111   : > { %5571 = vmatmul.mubr.bf16.gmra.mrb[24].mxu0 %v2826_v49  ;;  %5346 = vmatprep.mubr.bf16.mxu1 %v1073_v59  ;;  %v4112_v49 = vld [vmem:[%s7603_s2 + $0x48] sm:$0xff]  ;;  %v4113_v59 = vld [vmem:[%s7603_s2 + $0x50] sm:$0xff]  ;;  %v3152_v33 = vsel %vm3135_vm15, %v3143_v34, %v3151_v57  ;;  %v3161_v39 = vsel %vm3135_vm15, %v3151_v57, %v3160_v56  ;;  %v3186_v34 = vrot.slane %v3184_v30, 3  ;;  %v1088_v57 = vrot.slane %v7079_v54, 1  ;;  %v7127_v30 = vld [vmem:[%s6605_s25 + $0x78] sm:$0xff]  }
 0x112   : > { %5574 = vmatprep.mubr.bf16.mxu0 %v2828_v63  ;;  %5379 = vmatpush3.bf16.msra.mxu1 %v6177_v28  ;;  %v4182_v28 = vsel %vm4146_vm11, 1, %v6426_v17  ;;  %vm4148_vm13 = vcmp.gt.f32.partialorder %v4112_v49, 0.0  ;;  %vm4149_vm14 = vcmp.gt.f32.partialorder %v4113_v59, 0.0  ;;  %v3163_v63 = vshrl.u32 %v6850_v27, 16  ;;  %v6211_v49 = vld [vmem:[%s6605_s25 + $0x60] sm:$0xff]  }
 0x113   : > { %5380 = vmatprep.subr.bf16.mxu1 %v6181_v35  ;;  %4233 = vperm.xlu1 %6063, %v4182_v28   ;;  %v4184_v8 = vsel %vm4148_vm13, 1, %v6426_v17  ;;  %v4185_v55 = vsel %vm4149_vm14, 1, %v6426_v17  ;;  %v1081_v27 = vsel %vm1062_vm3, %v1078_v61, %v1080_v41  ;;  %v3183_v28 = vrot.slane %v3181_v29, 2  ;;  %v4119_v41 = vld [vmem:[%s7603_s2 + $0x80] sm:$0xff] }
 0x114   : > { %4236 = vperm.xlu0 %6062, %v4183_v18   ;;  %v3165_v47 = vrot.slane %v3163_v63, 2  ;;  %v7074_v18 = vld [vmem:[#allocation5 + $0x100] sm:$0xff]   ;;  %vm4155_vm7 = vcmp.gt.f32.partialorder %v4119_v41, 0.0  ;;  %v1086_v59 = vrot.slane %v6211_v49, 1  ;;  %v4190_v63 = vsel %vm4154_vm6, 1, %v6426_v17  ;;  %v4127_v54 = vld [vmem:[%s7603_s2 + $0xc0] sm:$0xff] }
 0x115   : > { %vm4163_vm2 = vcmp.gt.f32.partialorder %v4127_v54, 0.0 }
 0x116   : > { %5381 = vmatpush3.bf16.msra.mxu1 %v6181_v35  ;;  %v6187_v35 = vld [vmem:[#allocation5 + $0xf0] sm:$0xff]   ;;  %v3169_v58 = vor.u32 %v3168_v9, %v3165_v47  ;;  %v1089_v9 = vsel %vm1062_vm3, %v1086_v59, %v1088_v57 }
 0x117   : > { %5382 = vmatprep.subr.bf16.mxu1 %v6183_v53  ;;  %4239 = vperm.xlu1 %6063, %v4184_v8   ;;  %v3193_v8 = vshll.u32 %v6875_v44, 16 }
 0x118   : > { %5347 = vmatmul.mubr.bf16.gmra.mrb[8].mxu1 %v1075_v60  ;;  %4242 = vperm.xlu0 %6062, %v4185_v55   ;;  %v3170_v46 = vsel %vm3135_vm15, %v3160_v56, %v3169_v58  ;;  %v7093_v55 = vor.u32 %v3186_v34, %v3183_v28  ;;  %v4123_v56 = vld [vmem:[%s7603_s2 + $0xa0] sm:$0xff]  ;;  %v6191_v34 = vld [vmem:[#allocation5 + $0x220] sm:$0xff]  }
 0x119   : > { %5575 = vmatmul.mubr.bf16.gmra.mrb[28].mxu0 %v2830_v12  ;;  %5350 = vmatprep.mubr.bf16.mxu1 %v1077_v31  ;;  %v4116_v12 = vld [vmem:[%s7603_s2 + $0x68] sm:$0xff]  ;;  %v4117_v31 = vld [vmem:[%s7603_s2 + $0x70] sm:$0xff]  ;;  %vm4159_vm12 = vcmp.gt.f32.partialorder %v4123_v56, 0.0 }
 0x11a   : > { %5578 = vmatprep.mubr.bf16.mxu0 %v2832_v40  ;;  %5383 = vmatpush3.bf16.msra.mxu1 %v6183_v53  ;;  %v7043_v53 = vld [vmem:[%s6605_s25 + $0x58] sm:$0xff]   ;;  %vm4152_vm4 = vcmp.gt.f32.partialorder %v4116_v12, 0.0  ;;  %vm4153_vm5 = vcmp.gt.f32.partialorder %v4117_v31, 0.0  ;;  %v3174_v40 = vrot.slane %v3172_v51, 2 }
 0x11b   : > { %5384 = vmatprep.subr.bf16.mxu1 %v6185_v42  ;;  %v1084_v60 = vrot.slane %v7043_v53, 1  ;;  %4245 = vperm.xlu1 %6063, %v4186_v16   ;;  %v4188_v3 = vsel %vm4152_vm4, 1, %v6426_v17  ;;  %v4189_v43 = vsel %vm4153_vm5, 1, %v6426_v17  ;;  %v4122_v16 = vld [vmem:[%s7603_s2 + $0x98] sm:$0xff]  ;;  %vm4164_vm4 = vcmp.gt.f32.partialorder %v4128_v6, 0.0 }
 0x11c   : > { %4248 = vperm.xlu0 %6062, %v4187_v21   ;;  %vm4158_vm11 = vcmp.gt.f32.partialorder %v4122_v16, 0.0  ;;  %v6213_v21 = vld [vmem:[%s6605_s25 + $0x70] sm:$0xff]   ;;  %vm4165_vm5 = vcmp.gt.f32.partialorder %v4129_v15, 0.0 }
 0x11d   : > { %v1085_v61 = vsel %vm1062_vm3, %v1082_v13, %v1084_v60  ;;  %v3195_v13 = vrot.slane %v3193_v8, 3  ;;  %v1090_v12 = vrot.slane %v6213_v21, 1  ;;  %v4194_v29 = vsel %vm4158_vm11, 1, %v6426_v17  ;;  %v6192_v8 = vld [vmem:[#allocation5 + $0x228] sm:$0xff]  }
 0x11e   : > { %5385 = vmatpush3.bf16.msra.mxu1 %v6185_v42  ;;  %v3177_v42 = vrot.slane %v3175_v19, 3  ;;  %v6190_v19 = vld [vmem:[#allocation5 + $0x218] sm:$0xff]   ;;  %v4137_v15 = vld [vmem:[%s7603_s2 + $0x110] sm:$0xff] }
 0x11f   : > { %5386 = vmatprep.subr.bf16.mxu1 %v6187_v35  ;;  %4251 = vperm.xlu1 %6063, %v4188_v3   ;;  %v3208_v3 = vshrl.u32 %v6887_v24, 16  ;;  %v1091_v41 = vsel %vm1062_vm3, %v1088_v57, %v1090_v12 }
 0x120   : > { %5351 = vmatmul.mubr.bf16.gmra.mrb[12].mxu1 %v1079_v2  ;;  %4254 = vperm.xlu0 %6062, %v4189_v43   ;;  %v3178_v26 = vor.u32 %v3177_v42, %v3174_v40  ;;  %v4191_v2 = vsel %vm4155_vm7, 1, %v6426_v17  ;;  %v4195_v40 = vsel %vm4159_vm12, 1, %v6426_v17  ;;  %v4124_v42 = vld [vmem:[%s7603_s2 + $0xa8] sm:$0xff]  ;;  %v4125_v43 = vld [vmem:[%s7603_s2 + $0xb0] sm:$0xff] }
 0x121   : > { %5579 = vmatmul.mubr.bf16.gmra.mrb[32].mxu0 %v2834_v25  ;;  %5354 = vmatprep.mubr.bf16.mxu1 %v1081_v27  ;;  %v3199_v25 = vshrl.u32 %v6879_v45, 16  ;;  %v6188_v27 = vld [vmem:[#allocation5 + $0x210] sm:$0xff]   ;;  %vm4160_vm13 = vcmp.gt.f32.partialorder %v4124_v42, 0.0  ;;  %vm4161_vm14 = vcmp.gt.f32.partialorder %v4125_v43, 0.0 }
 0x122   : > { %5598 = vmatprep.mubr.bf16.mxu0 %v3152_v33  ;;  %5387 = vmatpush3.bf16.msra.mxu1 %v6187_v35  ;;  %v3190_v35 = vshrl.u32 %v6875_v44, 16  ;;  %v3202_v44 = vshll.u32 %v6879_v45, 16  ;;  %v1087_v33 = vsel %vm1062_vm3, %v1084_v60, %v1086_v59  ;;  %v3179_v47 = vsel %vm3135_vm15, %v3169_v58, %v3178_v26 }
 0x123   : > { %5388 = vmatprep.subr.bf16.mxu1 %v6189_v38  ;;  %4257 = vperm.xlu1 %6063, %v4190_v63   ;;  %v3188_v11 = vsel %vm3135_vm15, %v3178_v26, %v7093_v55  ;;  %v3201_v53 = vrot.slane %v3199_v25, 2  ;;  %v3642_v60 = vrot.slane %v7101_v4, 3  ;;  %v1092_v58 = vrot.slane %v7127_v30, 1  ;;  %v4126_v26 = vld [vmem:[%s7603_s2 + $0xb8] sm:$0xff] }
 0x124   : > { %4260 = vperm.xlu0 %6062, %v4191_v2   ;;  %v3192_v45 = vrot.slane %v3190_v35, 2  ;;  %v3204_v51 = vrot.slane %v3202_v44, 3  ;;  %v4196_v32 = vsel %vm4160_vm13, 1, %v6426_v17  ;;  %vm4162_vm0 = vcmp.gt.f32.partialorder %v4126_v26, 0.0  ;;  %v7167_v44 = vld [vmem:[%s6605_s25 + $0x88] sm:$0xff]  }
 0x125   : > { %v7123_v31 = vsel %vm3606_vm10, %v3640_v5, %v3642_v60  ;;  %v4198_v2 = vsel %vm4162_vm0, 1, %v6426_v17  ;;  %v4131_v60 = vld [vmem:[%s7603_s2 + $0xe0] sm:$0xff] }
 0x126   : > { %5389 = vmatpush3.bf16.msra.mxu1 %v6189_v38  ;;  %v4193_v38 = vsel %vm4157_vm9, 1, %v6426_v17  ;;  %v3205_v28 = vor.u32 %v3204_v51, %v3201_v53  ;;  %v6193_v53 = vld [vmem:[#allocation5 + $0x230] sm:$0xff]   ;;  %vm4167_vm7 = vcmp.gt.f32.partialorder %v4131_v60, 0.0 }
 0x127   : > { %5686 = vmatprep.subr.bf16.mxu1 %v7074_v18 }
 0x128   : > { %5355 = vmatmul.mubr.bf16.gmra.mrb[16].mxu1 %v1083_v1  ;;  %4266 = vperm.xlu0 %6062, %v4193_v38   ;;  %v3211_v1 = vshll.u32 %v6887_v24, 16  ;;  %v3220_v24 = vshll.u32 %v6891_v50, 16 }
 0x129   : > { %5599 = vmatmul.mubr.bf16.vlgmr.msra.gmra.mrb[0].mxu0 %v3161_v39  ;;  %5358 = vmatprep.mubr.bf16.mxu1 %v1085_v61  ;;  %v3196_v39 = vor.u32 %v3195_v13, %v3192_v45  ;;  %v3217_v61 = vshrl.u32 %v6891_v50, 16  ;;  %v3210_v50 = vrot.slane %v3208_v3, 2  ;;  %v4130_v45 = vld [vmem:[%s7603_s2 + $0xd8] sm:$0xff]  ;;  %v3238_v13 = vshll.u32 %v6905_v22, 16  ;;  %v6195_v3 = vld [vmem:[#allocation5 + $0x238] sm:$0xff]  }
 0x12a   : > { %5602 = vmatprep.mubr.bf16.mxu0 %v3170_v46  ;;  %5635 = vmatpush3.bf16.msra.mxu0 %v6912_v7  ;;  %v4192_v7 = vsel %vm4156_vm8, 1, %v6426_v17  ;;  %v1093_v46 = vsel %vm1062_vm3, %v1090_v12, %v1092_v58  ;;  %v3213_v59 = vrot.slane %v3211_v1, 3  ;;  %v3222_v35 = vrot.slane %v3220_v24, 3  ;;  %v4132_v12 = vld [vmem:[%s7603_s2 + $0xe8] sm:$0xff]  ;;  %v4133_v1 = vld [vmem:[%s7603_s2 + $0xf0] sm:$0xff] }
 0x12b   : > { %5636 = vmatprep.subr.bf16.mxu0 %v6186_v48  ;;  %4263 = vperm.xlu1 %6063, %v4192_v7   ;;  %v3197_v49 = vsel %vm3135_vm15, %v7093_v55, %v3196_v39  ;;  %v3219_v63 = vrot.slane %v3217_v61, 2  ;;  %v3206_v57 = vsel %vm3135_vm15, %v3196_v39, %v3205_v28  ;;  %v6215_v55 = vld [vmem:[%s6605_s25 + $0x80] sm:$0xff]   ;;  %vm4166_vm6 = vcmp.gt.f32.partialorder %v4130_v45, 0.0  ;;  %v6218_v61 = vld [vmem:[%s6605_s25 + $0x10] sm:$0xff]  }
 0x12c   : > { %4272 = vperm.xlu0 %6062, %v4195_v40   ;;  %v1094_v25 = vrot.slane %v6215_v55, 1  ;;  %v3214_v7 = vor.u32 %v3213_v59, %v3210_v50  ;;  %v6217_v40 = vld [vmem:[%s6605_s25 + $0x90] ss:$0 sps:$4 sm:$0x11]   ;;  %v4202_v43 = vsel %vm4166_vm6, 1, %v6426_v17  ;;  %v1526_v39 = vrot.slane %v6630_v23, 1 }
 0x12d   : > { %v3223_v38 = vor.u32 %v3222_v35, %v3219_v63  ;;  %v1098_v42 = vrot.slane %v6217_v40, 1  ;;  %v4203_v24 = vsel %vm4167_vm7, 1, %v6426_v17  ;;  %vm4168_vm8 = vcmp.gt.f32.partialorder %v4132_v12, 0.0  ;;  %v4135_v50 = vld [vmem:[%s7603_s2 + $0x100] sm:$0xff]  ;;  %v4136_v35 = vld [vmem:[%s7603_s2 + $0x108] sm:$0xff] }
 0x12e   : > { %5637 = vmatpush3.bf16.msra.mxu0 %v6186_v48  ;;  %v4197_v48 = vsel %vm4161_vm14, 1, %v6426_v17  ;;  %v1095_v16 = vsel %vm1062_vm3, %v1092_v58, %v1094_v25  ;;  %v3215_v51 = vsel %vm3135_vm15, %v3205_v28, %v3214_v7  ;;  %v3240_v58 = vrot.slane %v3238_v13, 3  ;;  %v6220_v45 = vld [vmem:[%s6605_s25 + $0x20] sm:$0xff]  }
 0x12f   : > { %5638 = vmatprep.subr.bf16.mxu0 %v6188_v27  ;;  %4269 = vperm.xlu1 %6063, %v4194_v29   ;;  %v3224_v29 = vsel %vm3135_vm15, %v3214_v7, %v3223_v38  ;;  %v1527_v28 = vrot.slane %v6218_v61, 1  ;;  %vm4169_vm9 = vcmp.gt.f32.partialorder %v4133_v1, 0.0  ;;  %v3253_v23 = vshrl.u32 %v6921_v10, 16 }
 0x130   : > { %5359 = vmatmul.mubr.bf16.gmra.mrb[20].mxu1 %v1087_v33  ;;  %4278 = vperm.xlu0 %6062, %v4197_v48   ;;  %v4199_v33 = vsel %vm4163_vm2, 1, %v6426_v17  ;;  %v4205_v26 = vsel %vm4169_vm9, 1, %v6426_v17  ;;  %vm4171_vm12 = vcmp.gt.f32.partialorder %v4135_v50, 0.0  ;;  %vm4172_vm13 = vcmp.gt.f32.partialorder %v4136_v35, 0.0 }
 0x131   : > { %5603 = vmatmul.mubr.bf16.gmra.mrb[4].mxu0 %v3179_v47  ;;  %5362 = vmatprep.mubr.bf16.mxu1 %v1089_v9  ;;  %v3226_v47 = vshrl.u32 %v6900_v14, 16  ;;  %v3229_v9 = vshll.u32 %v6900_v14, 16  ;;  %v4200_v14 = vsel %vm4164_vm4, 1, %v6426_v17  ;;  %v1528_v63 = vsel %vm1062_vm3, %v1526_v39, %v1527_v28 }
 0x132   : > { %5606 = vmatprep.mubr.bf16.mxu0 %v3188_v11  ;;  %5639 = vmatpush3.bf16.msra.mxu0 %v6188_v27  ;;  %v1096_v27 = vrot.slane %v7167_v44, 1  ;;  %v3235_v11 = vshrl.u32 %v6905_v22, 16  ;;  %v4201_v22 = vsel %vm4165_vm5, 1, %v6426_v17  ;;  %v3262_v7 = vshrl.u32 %v6934_v20, 16 }
 0x133   : > { %5640 = vmatprep.subr.bf16.mxu0 %v6190_v19  ;;  %4275 = vperm.xlu1 %6063, %v4196_v32   ;;  %v3231_v21 = vrot.slane %v3229_v9, 3  ;;  %v3244_v32 = vshrl.u32 %v6917_v62, 16  ;;  %vm4173_vm14 = vcmp.gt.f32.partialorder %v4137_v15, 0.0  ;;  %v4138_v9 = vld [vmem:[%s7603_s2 + $0x118] sm:$0xff]  ;;  %v3271_v13 = vshrl.u32 %v6942_v36, 16 }
 0x134   : > { %4284 = vperm.xlu0 %6062, %v4199_v33   ;;  %v1097_v56 = vsel %vm1062_vm3, %v1094_v25, %v1096_v27  ;;  %v3237_v30 = vrot.slane %v3235_v11, 2  ;;  %v1099_v59 = vsel %vm1062_vm3, %v1096_v27, %v1098_v42  ;;  %v6219_v25 = vld [vmem:[%s6605_s25 + $0x18] sm:$0xff]   ;;  %v4207_v27 = vsel %vm4171_vm12, 1, %v6426_v17 }
 0x135   : > { %v3246_v54 = vrot.slane %v3244_v32, 2  ;;  %v1529_v44 = vrot.slane %v6219_v25, 1  ;;  %v4208_v60 = vsel %vm4172_vm13, 1, %v6426_v17  ;;  %vm4174_vm0 = vcmp.gt.f32.partialorder %v4138_v9, 0.0  ;;  %v6228_v25 = vld [vmem:[%s6605_s25 + $0x14] sm:$0xf] }
 0x136   : > { %5641 = vmatpush3.bf16.msra.mxu0 %v6190_v19  ;;  %v3228_v19 = vrot.slane %v3226_v47, 2  ;;  %v3241_v48 = vor.u32 %v3240_v58, %v3237_v30  ;;  %v3265_v47 = vshll.u32 %v6934_v20, 16  ;;  %v4209_v20 = vsel %vm4173_vm14, 1, %v6426_v17 }
 0x137   : > { %5642 = vmatprep.subr.bf16.mxu0 %v6191_v34  ;;  %4281 = vperm.xlu1 %6063, %v4198_v2   ;;  %v3255_v2 = vrot.slane %v3253_v23, 2  ;;  %v4210_v12 = vsel %vm4174_vm0, 1, %v6426_v17  ;;  %v3280_v40 = vshrl.u32 %v6962_v52, 16  ;;  %v3283_v42 = vshll.u32 %v6962_v52, 16  ;;  %v6224_v52 = vld [vmem:[#allocation5 + $0x110] sm:$0xff]  }
 0x138   : > { %5363 = vmatmul.mubr.bf16.gmra.mrb[24].mxu1 %v1091_v41  ;;  %4290 = vperm.xlu0 %6062, %v4201_v22   ;;  %v3247_v41 = vshll.u32 %v6917_v62, 16  ;;  %v4204_v62 = vsel %vm4168_vm8, 1, %v6426_v17  ;;  %v3267_v22 = vrot.slane %v3265_v47, 3  ;;  %v3289_v61 = vshrl.u32 %v6972_v0, 16  ;;  %v6225_v23 = vld [vmem:[%s6605_s25 + $0x38] sm:$0xff]   ;;  %v7270_v47 = vld [vmem:[%s6605_s25 + $0x50] sm:$0xff]  }
 0x139   : > { %5607 = vmatmul.mubr.bf16.gmra.mrb[8].mxu0 %v3197_v49  ;;  %5366 = vmatprep.mubr.bf16.mxu1 %v1093_v46  ;;  %v4134_v46 = vld [vmem:[%s7603_s2 + $0xf8] sm:$0xff]  ;;  %v3256_v49 = vshll.u32 %v6921_v10, 16  ;;  %v3285_v32 = vrot.slane %v3283_v42, 3  ;;  %v1543_v9 = vrot.slane %v7270_v47, 1  ;;  %v7293_v42 = vld [vmem:[%s6605_s25 + $0x68] sm:$0xff]  }
 0x13a   : > { %5610 = vmatprep.mubr.bf16.mxu0 %v3206_v57  ;;  %5643 = vmatpush3.bf16.msra.mxu0 %v6191_v34  ;;  %v3232_v34 = vor.u32 %v3231_v21, %v3228_v19  ;;  %vm4170_vm11 = vcmp.gt.f32.partialorder %v4134_v46, 0.0  ;;  %v3249_v57 = vrot.slane %v3247_v41, 3  ;;  %v3291_v46 = vrot.slane %v3289_v61, 2 }
 0x13b   : > { %5644 = vmatprep.subr.bf16.mxu0 %v6192_v8  ;;  %4287 = vperm.xlu1 %6063, %v4200_v14   ;;  %v3258_v6 = vrot.slane %v3256_v49, 3  ;;  %v4206_v55 = vsel %vm4170_vm11, 1, %v6426_v17  ;;  %v1530_v14 = vsel %vm1062_vm3, %v1527_v28, %v1529_v44  ;;  %v3292_v17 = vshll.u32 %v6972_v0, 16 }
 0x13c   : > { %4296 = vperm.xlu0 %6062, %v4203_v24   ;;  %v3233_v10 = vsel %vm3135_vm15, %v3223_v38, %v3232_v34  ;;  %v3250_v33 = vor.u32 %v3249_v57, %v3246_v54  ;;  %v1531_v38 = vrot.slane %v6220_v45, 1  ;;  %v1537_v49 = vrot.slane %v6225_v23, 1  ;;  %v6227_v54 = vld [vmem:[#allocation5 + $0x118] sm:$0xff]   ;;  %v3585_v57 = vld [vmem:[%s6605_s25 + $0x10] sm:$0x8] }
 0x13d   : > { %v3259_v11 = vor.u32 %v3258_v6, %v3255_v2  ;;  %v6245_v23 = vld [vmem:[%s6605_s25 + $0x40] sm:$0xff]  }
 0x13e   : > { %5645 = vmatpush3.bf16.msra.mxu0 %v6192_v8  ;;  %v3242_v8 = vsel %vm3135_vm15, %v3232_v34, %v3241_v48  ;;  %v3282_v34 = vrot.slane %v3280_v40, 2 }
 0x13f   : > { %5646 = vmatprep.subr.bf16.mxu0 %v6193_v53  ;;  %4293 = vperm.xlu1 %6063, %v4202_v43   ;;  %v3260_v19 = vsel %vm3135_vm15, %v3250_v33, %v3259_v11  ;;  %v6223_v43 = vld [vmem:[#allocation5 + $0x108] sm:$0xff]  }
 0x140   : > { %5367 = vmatmul.mubr.bf16.gmra.mrb[28].mxu1 %v1095_v16  ;;  %4302 = vperm.xlu0 %6062, %v4205_v26   ;;  %v3251_v16 = vsel %vm3135_vm15, %v3241_v48, %v3250_v33  ;;  %v3294_v48 = vrot.slane %v3292_v17, 3  ;;  %v3286_v50 = vor.u32 %v3285_v32, %v3282_v34  ;;  %v3301_v26 = vshll.u32 %v7101_v4, 16  ;;  %v7298_v17 = vld [vmem:[%s6605_s25 + $0x70] sm:$0xff]  }
 0x141   : > { %5611 = vmatmul.mubr.bf16.gmra.mrb[12].mxu0 %v3215_v51  ;;  %5370 = vmatprep.mubr.bf16.mxu1 %v1097_v56  ;;  %v3264_v56 = vrot.slane %v3262_v7, 2  ;;  %v1532_v51 = vsel %vm1062_vm3, %v1529_v44, %v1531_v38  ;;  %v6229_v44 = vld [vmem:[#allocation5 + $0x120] sm:$0xff]  }
 0x142   : > { %5614 = vmatprep.mubr.bf16.mxu0 %v3224_v29  ;;  %5647 = vmatpush3.bf16.msra.mxu0 %v6193_v53  ;;  %v3274_v53 = vshll.u32 %v6942_v36, 16  ;;  %v3273_v36 = vrot.slane %v3271_v13, 2  ;;  %v6221_v29 = vld [vmem:[%s6605_s25 + $0x28] sm:$0xff]   ;;  %v3303_v15 = vrot.slane %v3301_v26, 3 }
 0x143   : > { %5648 = vmatprep.subr.bf16.mxu0 %v6195_v3  ;;  %4299 = vperm.xlu1 %6063, %v4204_v62   ;;  %v1533_v30 = vrot.slane %v6221_v29, 1  ;;  %v3268_v58 = vor.u32 %v3267_v22, %v3264_v56  ;;  %v6226_v62 = vld [vmem:[%s6605_s25 + $0x40] sm:$0xff]   ;;  %v6233_v13 = vld [vmem:[#allocation5 + $0x128] sm:$0xff]   ;;  %v7279_v56 = vld [vmem:[%s6605_s25 + $0x58] sm:$0xff]  }
 0x144   : > { %4308 = vperm.xlu0 %6062, %v4207_v27   ;;  %v3276_v21 = vrot.slane %v3274_v53, 3  ;;  %v6230_v27 = vld [vmem:[%s6605_s25 + $0x48] sm:$0xff]   ;;  %v1545_v22 = vrot.slane %v7279_v56, 1 }
 0x145   : > { %v3269_v28 = vsel %vm3135_vm15, %v3259_v11, %v3268_v58  ;;  %v1541_v33 = vrot.slane %v6230_v27, 1 }
 0x146   : > { %5649 = vmatpush3.bf16.msra.mxu0 %v6195_v3  ;;  %v6222_v3 = vld [vmem:[%s6605_s25 + $0x30] sm:$0xff]   ;;  %v3277_v39 = vor.u32 %v3276_v21, %v3273_v36  ;;  %v7284_v36 = vld [vmem:[%s6605_s25 + $0x60] sm:$0xff]  }
 0x147   : > { %4305 = vperm.xlu1 %6063, %v4206_v55   ;;  %v1535_v1 = vrot.slane %v6222_v3, 1  ;;  %v1547_v21 = vrot.slane %v7284_v36, 1 }
 0x148   : > { %5371 = vmatmul.mubr.bf16.gmra.mrb[32].mxu1 %v1099_v59  ;;  %4314 = vperm.xlu0 %6062, %v4209_v20   ;;  %v3278_v41 = vsel %vm3135_vm15, %v3268_v58, %v3277_v39  ;;  %v1539_v59 = vrot.slane %v6226_v62, 1  ;;  %v1546_v58 = vsel %vm1062_vm3, %v1543_v9, %v1545_v22 }
 0x149   : > { %5615 = vmatmul.mubr.bf16.gmra.mrb[16].mxu0 %v3233_v10  ;;  %5390 = vmatprep.mubr.bf16.mxu1 %v1528_v63  ;;  %v1536_v24 = vsel %vm1062_vm3, %v1533_v30, %v1535_v1  ;;  %v3298_v63 = vshrl.u32 %v7101_v4, 16  ;;  %v3295_v10 = vor.u32 %v3294_v48, %v3291_v46  ;;  %v1538_v35 = vsel %vm1062_vm3, %v1535_v1, %v1537_v49  ;;  %v7307_v46 = vld [vmem:[%s6605_s25 + $0x78] sm:$0xff]  }
 0x14a   : > { %5618 = vmatprep.mubr.bf16.mxu0 %v3242_v8  ;;  %v3287_v8 = vsel %vm3135_vm15, %v3277_v39, %v3286_v50  ;;  %v1540_v2 = vsel %vm1062_vm3, %v1537_v49, %v1539_v59  ;;  %v4791_v4 = vcombine.low %v3585_v57, %v6228_v25  ;;  %v1542_v53 = vsel %vm1062_vm3, %v1539_v59, %v1541_v33  ;;  %v6241_v39 = vld [vmem:[%s6605_s25 + $0x30] sm:$0xff]   ;;  %v6247_v59 = vld [vmem:[%s6605_s25 + $0x48] sm:$0xff]  }
 0x14b   : > { %4311 = vperm.xlu1 %6063, %v4208_v60   ;;  %v3300_v6 = vrot.slane %v3298_v63, 2  ;;  %v3296_v55 = vsel %vm3135_vm15, %v3286_v50, %v3295_v10  ;;  %v1548_v1 = vsel %vm1062_vm3, %v1545_v22, %v1547_v21  ;;  %v3614_v61 = vrot.slane %v6241_v39, 3  ;;  %v7312_v50 = vld [vmem:[%s6605_s25 + $0x80] sm:$0xff]  }
 0x14c   : > { %v3607_v45 = vrot.slane %v4791_v4, 3  ;;  %v1553_v48 = vrot.slane %v7307_v46, 1  ;;  %v3618_v49 = vrot.slane %v6245_v23, 3  ;;  %v1555_v62 = vrot.slane %v7312_v50, 1 }
 0x14d   : > { %v3304_v7 = vor.u32 %v3303_v15, %v3300_v6  ;;  %v3620_v63 = vrot.slane %v6247_v59, 3  ;;  %v7326_v15 = vld [vmem:[%s6605_s25 + $0x90] sm:$0xff]   ;;  %v1945_v25 = vshrl.u32 %v7270_v47, 16  ;;  %v1948_v4 = vshll.u32 %v7270_v47, 16 }
 0x14e   : > { %v1954_v47 = vshrl.u32 %v7279_v56, 16  ;;  %v1963_v22 = vshrl.u32 %v7284_v36, 16  ;;  %v1975_v39 = vshll.u32 %v7293_v42, 16 }
 0x14f   : > { %4317 = vperm.xlu1 %6063, %v4210_v12   ;;  %v3305_v60 = vsel %vm3135_vm15, %v3295_v10, %v3304_v7  ;;  %v6238_v12 = vld [vmem:[%s6605_s25 + $0x28] sm:$0xff]   ;;  %v3621_v57 = vsel %vm3606_vm10, %v3618_v49, %v3620_v63  ;;  %v6197_v7 = vld [vmem:[%s6605_s25 + $0x98] ss:$0 sps:$4 sm:$0x11]  }
 0x150   : > { %5391 = vmatmul.mubr.bf16.vlgmr.msra.gmra.mrb[0].mxu1 %v1530_v14  ;;  %v1544_v14 = vsel %vm1062_vm3, %v1541_v33, %v1543_v9  ;;  %v3612_v29 = vrot.slane %v6238_v12, 3 }
 0x151   : > { %5619 = vmatmul.mubr.bf16.gmra.mrb[20].mxu0 %v3251_v16  ;;  %5694 = vmatpush3.bf16.msra.mxu1 %v7074_v18  ;;  %v1534_v18 = vsel %vm1062_vm3, %v1531_v38, %v1533_v30  ;;  %v6232_v38 = vld [vmem:[%s6605_s25 + $0x18] sm:$0xff]  }
 0x152   : > { %5394 = vmatprep.mubr.bf16.mxu1 %v1532_v51  ;;  %5622 = vmatprep.mubr.bf16.mxu0 %v3260_v19  ;;  %v3608_v11 = vrot.slane %v6232_v38, 3  ;;  %v6234_v16 = vld [vmem:[#allocation5 + $0x130] sm:$0xff]   ;;  %v6236_v51 = vld [vmem:[%s6605_s25 + $0x20] sm:$0xff]   ;;  %v3615_v32 = vsel %vm3606_vm10, %v3612_v29, %v3614_v61  ;;  %v1947_v38 = vrot.slane %v1945_v25, 1 }
 0x153   : > { %5687 = vmatprep.subr.bf16.mxu1 %v6223_v43  ;;  %v3610_v19 = vrot.slane %v6236_v51, 3  ;;  %v6239_v30 = vld [vmem:[#allocation5 + $0x138] sm:$0xff]   ;;  %v1966_v51 = vshll.u32 %v7284_v36, 16 }
 0x154   : > { %v3609_v20 = vsel %vm3606_vm10, %v3607_v45, %v3608_v11 }
 0x155   : > { %5695 = vmatpush3.bf16.msra.mxu1 %v6223_v43  ;;  %v3611_v3 = vsel %vm3606_vm10, %v3608_v11, %v3610_v19  ;;  %v3613_v40 = vsel %vm3606_vm10, %v3610_v19, %v3612_v29  ;;  %v1549_v43 = vrot.slane %v7293_v42, 1  ;;  %v1950_v11 = vrot.slane %v1948_v4, 2  ;;  %v6253_v19 = vld [vmem:[%s6605_s25 + $0x68] sm:$0xff]  }
 0x156   : > { %5688 = vmatprep.subr.bf16.mxu1 %v6224_v52  ;;  %v1956_v29 = vrot.slane %v1954_v47, 1  ;;  %v2017_v47 = vshrl.u32 %v7326_v15, 16 }
 0x157   : > { %v1550_v34 = vsel %vm1062_vm3, %v1547_v21, %v1549_v43  ;;  %v3628_v21 = vrot.slane %v6253_v19, 3 }
 0x158   : > { %5395 = vmatmul.mubr.bf16.gmra.mrb[4].mxu1 %v1534_v18  ;;  %v1551_v18 = vrot.slane %v7298_v17, 1  ;;  %v2019_v19 = vrot.slane %v2017_v47, 1 }
 0x159   : > { %5623 = vmatmul.mubr.bf16.gmra.mrb[24].mxu0 %v3269_v28  ;;  %5398 = vmatprep.mubr.bf16.mxu1 %v1536_v24  ;;  %v6243_v28 = vld [vmem:[%s6605_s25 + $0x38] sm:$0xff]  }
 0x15a   : > { %5626 = vmatprep.mubr.bf16.mxu0 %v3278_v41  ;;  %5696 = vmatpush3.bf16.msra.mxu1 %v6224_v52  ;;  %v3616_v24 = vrot.slane %v6243_v28, 3  ;;  %v1552_v52 = vsel %vm1062_vm3, %v1549_v43, %v1551_v18  ;;  %v1554_v26 = vsel %vm1062_vm3, %v1551_v18, %v1553_v48  ;;  %v1972_v43 = vshrl.u32 %v7293_v42, 16 }
 0x15b   : > { %5689 = vmatprep.subr.bf16.mxu1 %v6227_v54 }
 0x15c   : > { %v3617_v41 = vsel %vm3606_vm10, %v3614_v61, %v3616_v24  ;;  %v3619_v10 = vsel %vm3606_vm10, %v3616_v24, %v3618_v49  ;;  %v6254_v61 = vld [vmem:[%s6605_s25 + $0x70] sm:$0xff]   ;;  %v1981_v24 = vshrl.u32 %v7298_v17, 16 }
 0x15d   : > { %v3630_v18 = vrot.slane %v6254_v61, 3 }
 0x15e   : > { %5697 = vmatpush3.bf16.msra.mxu1 %v6227_v54  ;;  %v1556_v54 = vsel %vm1062_vm3, %v1553_v48, %v1555_v62  ;;  %v1977_v48 = vrot.slane %v1975_v39, 2  ;;  %v1983_v42 = vrot.slane %v1981_v24, 1 }
 0x15f   : > { %5690 = vmatprep.subr.bf16.mxu1 %v6229_v44  ;;  %v3631_v23 = vsel %vm3606_vm10, %v3628_v21, %v3630_v18 }
 0x160   : > { %5399 = vmatmul.mubr.bf16.gmra.mrb[8].mxu1 %v1538_v35  ;;  %v7321_v35 = vld [vmem:[%s6605_s25 + $0x88] sm:$0xff]  }
 0x161   : > { %5627 = vmatmul.mubr.bf16.gmra.mrb[28].mxu0 %v3287_v8  ;;  %5402 = vmatprep.mubr.bf16.mxu1 %v1540_v2  ;;  %v1557_v8 = vrot.slane %v7321_v35, 1  ;;  %v6249_v2 = vld [vmem:[%s6605_s25 + $0x50] sm:$0xff]  }
 0x162   : > { %5630 = vmatprep.mubr.bf16.mxu0 %v3296_v55  ;;  %5698 = vmatpush3.bf16.msra.mxu1 %v6229_v44  ;;  %v3622_v6 = vrot.slane %v6249_v2, 3  ;;  %v1559_v55 = vrot.slane %v7326_v15, 1  ;;  %v6251_v44 = vld [vmem:[%s6605_s25 + $0x58] sm:$0xff]   ;;  %v2002_v2 = vshll.u32 %v7312_v50, 16 }
 0x163   : > { %5691 = vmatprep.subr.bf16.mxu1 %v6233_v13  ;;  %v3624_v27 = vrot.slane %v6251_v44, 3  ;;  %v1558_v33 = vsel %vm1062_vm3, %v1555_v62, %v1557_v8 }
 0x164   : > { %v3623_v9 = vsel %vm3606_vm10, %v3620_v63, %v3622_v6  ;;  %v1560_v45 = vsel %vm1062_vm3, %v1557_v8, %v1559_v55  ;;  %v1990_v63 = vshrl.u32 %v7307_v46, 16  ;;  %v1999_v8 = vshrl.u32 %v7312_v50, 16 }
 0x165   : > { %v2008_v50 = vshrl.u32 %v7321_v35, 16 }
 0x166   : > { %5699 = vmatpush3.bf16.msra.mxu1 %v6233_v13  ;;  %v3625_v13 = vsel %vm3606_vm10, %v3622_v6, %v3624_v27  ;;  %v6257_v6 = vld [vmem:[%s6605_s25 + $0x88] sm:$0xff]   ;;  %v1992_v4 = vrot.slane %v1990_v63, 1 }
 0x167   : > { %5692 = vmatprep.subr.bf16.mxu1 %v6234_v16 }
 0x168   : > { %5403 = vmatmul.mubr.bf16.gmra.mrb[12].mxu1 %v1542_v53  ;;  %v1561_v53 = vrot.slane %v6197_v7, 1  ;;  %v2004_v7 = vrot.slane %v2002_v2, 2 }
 0x169   : > { %5631 = vmatmul.mubr.bf16.gmra.mrb[32].mxu0 %v3305_v60  ;;  %5406 = vmatprep.mubr.bf16.mxu1 %v1544_v14  ;;  %v1957_v60 = vshll.u32 %v7279_v56, 16  ;;  %v6252_v14 = vld [vmem:[%s6605_s25 + $0x60] sm:$0xff]  }
 0x16a   : > { %5650 = vmatprep.mubr.bf16.mxu0 %v3609_v20  ;;  %5700 = vmatpush3.bf16.msra.mxu1 %v6234_v16  ;;  %v3626_v20 = vrot.slane %v6252_v14, 3  ;;  %v1951_v16 = vor.u32 %v1950_v11, %v1947_v38  ;;  %v1562_v12 = vsel %vm1062_vm3, %v1559_v55, %v1561_v53  ;;  %v3636_v55 = vrot.slane %v6257_v6, 3  ;;  %v6258_v11 = vld [vmem:[%s6605_s25 + $0x90] sm:$0xff]  }
 0x16b   : > { %5693 = vmatprep.subr.bf16.mxu1 %v6239_v30  ;;  %v2011_v38 = vshll.u32 %v7321_v35, 16 }
 0x16c   : > { %v1952_v56 = vsel %vm1863_vm1, %v6728_v37, %v1951_v16  ;;  %v1984_v37 = vshll.u32 %v7298_v17, 16 }
 0x16e   : > { %5701 = vmatpush3.bf16.msra.mxu1 %v6239_v30  ;;  %v1959_v30 = vrot.slane %v1957_v60, 2  ;;  %v1986_v62 = vrot.slane %v1984_v37, 2  ;;  %v2020_v60 = vshll.u32 %v7326_v15, 16 }
 0x170   : > { %5407 = vmatmul.mubr.bf16.gmra.mrb[16].mxu1 %v1546_v58  ;;  %v3627_v58 = vsel %vm3606_vm10, %v3624_v27, %v3626_v20  ;;  %v1960_v36 = vor.u32 %v1959_v30, %v1956_v29  ;;  %v6259_v29 = vld [vmem:[%s6605_s25 + $0x98] ss:$0 sps:$4 sm:$0x33]  }
 0x171   : > { %5651 = vmatmul.mubr.bf16.vlgmr.msra.gmra.mrb[0].mxu0 %v3611_v3  ;;  %5410 = vmatprep.mubr.bf16.mxu1 %v1548_v1  ;;  %v1965_v3 = vrot.slane %v1963_v22, 1  ;;  %v1968_v1 = vrot.slane %v1966_v51, 2  ;;  %v2026_v15 = vshrl.u32 %v6259_v29, 16  ;;  %v2029_v30 = vshll.u32 %v6259_v29, 16 }
 0x172   : > { %5654 = vmatprep.mubr.bf16.mxu0 %v3613_v40  ;;  %v3629_v40 = vsel %vm3606_vm10, %v3626_v20, %v3628_v21  ;;  %v2010_v20 = vrot.slane %v2008_v50, 1  ;;  %v2022_v21 = vrot.slane %v2020_v60, 2 }
 0x173   : > { %v1969_v28 = vor.u32 %v1968_v1, %v1965_v3  ;;  %v2028_v3 = vrot.slane %v2026_v15, 1  ;;  %v2031_v1 = vrot.slane %v2029_v30, 2 }
 0x175   : > { %v1970_v49 = vsel %vm1863_vm1, %v1960_v36, %v1969_v28  ;;  %v2032_v0 = vor.u32 %v2031_v1, %v2028_v3 }
 0x178   : > { %5411 = vmatmul.mubr.bf16.gmra.mrb[20].mxu1 %v1550_v34  ;;  %v6255_v34 = vld [vmem:[%s6605_s25 + $0x78] sm:$0xff]  }
 0x179   : > { %5655 = vmatmul.mubr.bf16.gmra.mrb[4].mxu0 %v3615_v32  ;;  %5414 = vmatprep.mubr.bf16.mxu1 %v1552_v52  ;;  %v3632_v32 = vrot.slane %v6255_v34, 3  ;;  %v1961_v52 = vsel %vm1863_vm1, %v1951_v16, %v1960_v36  ;;  %v2013_v16 = vrot.slane %v2011_v38, 2  ;;  %v4213_v36 = vpop.permute.xlu0 %4212 }
 0x17a   : > { %5658 = vmatprep.mubr.bf16.mxu0 %v3617_v41  ;;  %v1974_v41 = vrot.slane %v1972_v43, 1  ;;  %v4219_v43 = vpop.permute.xlu1 %4218 }
 0x17b   : > { %v3633_v59 = vsel %vm3606_vm10, %v3630_v18, %v3632_v32  ;;  %vm4321_vm3 = vcmp.eq.s32.totalorder %v4219_v43, 1 }
 0x17c   : > { %v1978_v17 = vor.u32 %v1977_v48, %v1974_v41 }
 0x17d   : > { %v4216_v39 = vpop.permute.xlu0 %4215 }
 0x17e   : > { %v1979_v25 = vsel %vm1863_vm1, %v1969_v28, %v1978_v17  ;;  %v4222_v37 = vpop.permute.xlu1 %4221  ;;  %vm4320_vm15 = vcmp.eq.s32.totalorder %v4216_v39, 1 }
 0x180   : > { %5415 = vmatmul.mubr.bf16.gmra.mrb[24].mxu1 %v1554_v26  ;;  %v1993_v26 = vshll.u32 %v7307_v46, 16  ;;  %v2001_v46 = vrot.slane %v1999_v8, 1 }
 0x181   : > { %5659 = vmatmul.mubr.bf16.gmra.mrb[8].mxu0 %v3619_v10  ;;  %5418 = vmatprep.mubr.bf16.mxu1 %v1556_v54  ;;  %v6256_v10 = vld [vmem:[%s6605_s25 + $0x80] sm:$0xff]   ;;  %v7384_v34 = vpop.permute.xlu0 %4224  ;;  %s5993_s25 = smul.u32 144, %s6601_s11 }
 0x182   : > { %5662 = vmatprep.mubr.bf16.mxu0 %v3621_v57  ;;  %v3634_v54 = vrot.slane %v6256_v10, 3  ;;  %v1987_v57 = vor.u32 %v1986_v62, %v1983_v42  ;;  %v1995_v44 = vrot.slane %v1993_v26, 2  ;;  %v2005_v53 = vor.u32 %v2004_v7, %v2001_v46 }
 0x183   : > { %v7386_v48 = vpop.permute.xlu1 %4227  ;;  %s7425_s14 = scalar_lea.vmem [#allocation7], %s5993_s25  ;;  %vm4323_vm2 = vcmp.eq.s32.totalorder %v7384_v34, 1 }
 0x184   : > { %v3635_v27 = vsel %vm3606_vm10, %v3632_v32, %v3634_v54  ;;  %vm4324_vm4 = vcmp.eq.s32.totalorder %v7386_v48, 1  ;;  %s4530_s5 = sshll.u32 %s7425_s14, 4  ;;  %s7524_s5 = int_to_ptr.vmem [resolvable:$true] %s4530_s5 }
 0x185   : > { %s6318_s7 = scalar_lea.vmem %s7524_s5, 2304  ;;  %p6325_p10 = scmp.lt.s32.totalorder %s7524_s5, %s6323_s9 }
 0x186   : > { %p6319_p4 = scmp.ne.s32.totalorder %s7524_s5, %s6318_s7  ;;  %p6326_p11 = scmp.lt.s32.totalorder %s6324_s10, %s6318_s7 }
 0x188   : > { %5419 = vmatmul.mubr.bf16.gmra.mrb[28].mxu1 %v1558_v33  ;;  %v1988_v33 = vsel %vm1863_vm1, %v1978_v17, %v1987_v57  ;;  %p6320_p6 = pnand %p6319_p4, %p6550_p12  ;;  %p6327_p3 = por %p6326_p11, %p6325_p10 }
 0x189   : > { %5663 = vmatmul.mubr.bf16.gmra.mrb[12].mxu0 %v3623_v9  ;;  %5422 = vmatprep.mubr.bf16.mxu1 %v1560_v45  ;;  %v3637_v9 = vsel %vm3606_vm10, %v3634_v54, %v3636_v55  ;;  %v1996_v45 = vor.u32 %v1995_v44, %v1992_v4 }
 0x18a   : > { %5666 = vmatprep.mubr.bf16.mxu0 %v3625_v13  ;;  %v3638_v13 = vrot.slane %v6258_v11, 3  ;;  %p6321_p8 = pneg %p6320_p6 }
 0x18b   : > { %v1997_v14 = vsel %vm1863_vm1, %v1987_v57, %v1996_v45  ;;  %v2006_v51 = vsel %vm1863_vm1, %v1996_v45, %v2005_v53 }
 0x18c   : > { %v3639_v22 = vsel %vm3606_vm10, %v3636_v55, %v3638_v13  ;;  %v3641_v35 = vsel %vm3606_vm10, %v3638_v13, %v3640_v5  ;;  %vm4322_vm10 = vcmp.eq.s32.totalorder %v4222_v37, 1  ;;  %p6328_p7 = pnand %p6327_p3, %p6321_p8 }
 0x190   : > { %5423 = vmatmul.mubr.bf16.gmra.mrb[32].mxu1 %v1562_v12  ;;  %v2014_v12 = vor.u32 %v2013_v16, %v2010_v20 }
 0x191   : > { %5667 = vmatmul.mubr.bf16.gmra.mrb[16].mxu0 %v3627_v58  ;;  %5458 = vmatprep.mubr.bf16.mxu1 %v1952_v56  ;;  %v2023_v58 = vor.u32 %v2022_v21, %v2019_v19 }
 0x192   : > { %5670 = vmatprep.mubr.bf16.mxu0 %v3629_v40  ;;  %v2015_v56 = vsel %vm1863_vm1, %v2005_v53, %v2014_v12  ;;  %v7394_v42 = vpop.permute.xlu1 %4233 }
 0x193   : > { %v2024_v40 = vsel %vm1863_vm1, %v2014_v12, %v2023_v58  ;;  %v2033_v5 = vsel %vm1863_vm1, %v2023_v58, %v2032_v0  ;;  %vm4319_vm1 = vcmp.eq.s32.totalorder %v4213_v36, 1  ;;  %vm4326_vm6 = vcmp.eq.s32.totalorder %v7394_v42, 1 }
 0x196   : > { %v7404_v26 = vpop.permute.xlu1 %4239 }
 0x197   : > { %vm4328_vm8 = vcmp.eq.s32.totalorder %v7404_v26, 1 }
 0x198   : > { %5459 = vmatmul.mubr.bf16.vlgmr.msra.gmra.mrb[16].mxu1 %v1961_v52 }
 0x199   : > { %5671 = vmatmul.mubr.bf16.gmra.mrb[20].mxu0 %v3631_v23  ;;  %5462 = vmatprep.mubr.bf16.mxu1 %v1970_v49  ;;  %v7390_v23 = vpop.permute.xlu0 %4230 }
 0x19a   : > { %5674 = vmatprep.mubr.bf16.mxu0 %v3633_v59  ;;  %v7416_v6 = vpop.permute.xlu1 %4245  ;;  %vm4325_vm5 = vcmp.eq.s32.totalorder %v7390_v23, 1 }
 0x19b   : > { %vm4330_vm11 = vcmp.eq.s32.totalorder %v7416_v6, 1 }
 0x19d   : > { %v7398_v59 = vpop.permute.xlu0 %4236 }
 0x19e   : > { %vm4327_vm7 = vcmp.eq.s32.totalorder %v7398_v59, 1 }
 0x1a0   : > { %5463 = vmatmul.mubr.bf16.gmra.mrb[20].mxu1 %v1979_v25 }
 0x1a1   : > { %5675 = vmatmul.mubr.bf16.gmra.mrb[24].mxu0 %v3635_v27  ;;  %5466 = vmatprep.mubr.bf16.mxu1 %v1988_v33  ;;  %v7406_v10 = vpop.permute.xlu0 %4242  ;;  %v7421_v27 = vpop.permute.xlu1 %4251 }
 0x1a2   : > { %5678 = vmatprep.mubr.bf16.mxu0 %v3637_v9  ;;  %vm4329_vm9 = vcmp.eq.s32.totalorder %v7406_v10, 1  ;;  %vm4332_vm13 = vcmp.eq.s32.totalorder %v7421_v27, 1 }
 0x1a5   : > { %v7418_v55 = vpop.permute.xlu0 %4248  ;;  %v7428_v16 = vpop.permute.xlu1 %4257 }
 0x1a6   : > { %vm4331_vm12 = vcmp.eq.s32.totalorder %v7418_v55, 1  ;;  %vm4334_vm0 = vcmp.eq.s32.totalorder %v7428_v16, 1 }
 0x1a8   : > { %5467 = vmatmul.mubr.bf16.gmra.mrb[24].mxu1 %v1997_v14 }
 0x1a9   : > { %5679 = vmatmul.mubr.bf16.gmra.mrb[28].mxu0 %v3639_v22  ;;  %5470 = vmatprep.mubr.bf16.mxu1 %v2006_v51  ;;  %v7423_v7 = vpop.permute.xlu0 %4254 }
 0x1aa   : > { %5682 = vmatprep.mubr.bf16.mxu0 %v3641_v35  ;;  %vm4333_vm14 = vcmp.eq.s32.totalorder %v7423_v7, 1 }
 0x1ad   : > { %v7431_v19 = vpop.permute.xlu0 %4260 }
 0x1b0   : > { %5471 = vmatmul.mubr.bf16.gmra.mrb[28].mxu1 %v2015_v56 }
 0x1b1   : > { %5683 = vmatmul.mubr.bf16.gmra.mrb[32].mxu0 %v7123_v31  ;;  %5474 = vmatprep.mubr.bf16.mxu1 %v2024_v40 }
 0x1b8   : > { %5475 = vmatmul.mubr.bf16.gmra.mrb[32].mxu1 %v2033_v5 }
 0x223   : > { %v5392_v61 = vpop.f32.mrb[0].mxu1 }
 0x224   : > { %v1663_v18 = vpop.f32.mrb[1].mxu1 }
 0x225   : > { %v5393_v28 = vpop.f32.mrb[2].mxu1 }
 0x226   : > { %v1666_v24 = vpop.f32.mrb[3].mxu1 }
 0x22b   : > { %v5396_v32 = vpop.f32.mrb[4].mxu1 }
 0x22c   : > { %v1679_v52 = vpop.f32.mrb[5].mxu1 }
 0x22d   : > { %v5397_v41 = vpop.f32.mrb[6].mxu1 }
 0x22e   : > { %v7388_v31 = vpop.f32.mrb[7].mxu1 }
 0x233   : > { %v7392_v49 = vpop.f32.mrb[8].mxu1 }
 0x234   : > { %v7396_v62 = vpop.f32.mrb[9].mxu1 }
 0x235   : > { %v7400_v17 = vpop.f32.mrb[10].mxu1 }
 0x236   : > { %v7402_v63 = vpop.f32.mrb[11].mxu1 }
 0x23b   : > { %v7408_v54 = vpop.f32.mrb[12].mxu1 }
 0x23c   : > { %v7410_v57 = vpop.f32.mrb[13].mxu1 }
 0x23d   : > { %v7412_v8 = vpop.f32.mrb[14].mxu1 }
 0x23e   : > { %v7414_v2 = vpop.f32.mrb[15].mxu1 }
 0x244   : > { %v5652_v25 = vpop.f32.mrb[0].mxu0 }
 0x245   : > { %v5702_v4 = vadd.f32 %v5652_v25, %v5392_v61  ;;  %v3744_v44 = vpop.f32.mrb[1].mxu0 }
 0x246   : > { %v5703_v33 = vadd.f32 %v3744_v44, %v1663_v18  ;;  %v5653_v46 = vpop.f32.mrb[2].mxu0 }
 0x247   : > { %v5704_v9 = vadd.f32 %v5653_v46, %v5393_v28  ;;  %v3747_v45 = vpop.f32.mrb[3].mxu0  ;;  %v4357_v13 = vsel %vm4321_vm3, %v5702_v4, 0.0  ;;  %v7438_v28 = vpop.permute.xlu1 %4263 }
 0x248   : > { %v4355_v50 = vsel %vm4319_vm1, %v5703_v33, 0.0  ;;  %v5705_v38 = vadd.f32 %v3747_v45, %v1666_v24  ;;  %v4435_v21 = vmul.f32 %v5702_v4, %v4357_v13  ;;  %vm4335_vm1 = vcmp.eq.s32.totalorder %v7431_v19, 1 }
 0x249   : > { %v4885_v11 = vpack.c.bf16 %v5704_v9, %v5702_v4  ;;  %v4433_v60 = vmul.f32 %v5703_v33, %v4355_v50  ;;  %v4358_v22 = vsel %vm4322_vm10, %v5704_v9, 0.0  ;;  %vm4336_vm3 = vcmp.eq.s32.totalorder %v7438_v28, 1 }
 0x24a   : > { %v4880_v53 = vpack.c.bf16 %v5705_v38, %v5703_v33  ;;  %v4356_v47 = vsel %vm4320_vm15, %v5705_v38, 0.0  ;;  %v4436_v56 = vmul.f32 %v5704_v9, %v4358_v22 }
 0x24b   : > { %4967 = vst [vmem:[%s7425_s14 + $0x8] sm:$0xff] %v4885_v11   ;;  %v4391_v14 = vadd.f32 %v4356_v47, %v4355_v50  ;;  %v4434_v20 = vmul.f32 %v5705_v38, %v4356_v47 }
 0x24c   : > { %4881 = vst [vmem:[%s7425_s14] sm:$0xff] %v4880_v53   ;;  %v5656_v51 = vpop.f32.mrb[4].mxu0  ;;  %v7456_v53 = vpop.permute.xlu1 %4269 }
 0x24d   : > { %v4392_v35 = vadd.f32 %v4391_v14, %v4357_v13  ;;  %v4469_v12 = vadd.f32 %v4434_v20, %v4433_v60  ;;  %v5706_v29 = vadd.f32 %v5656_v51, %v5396_v32  ;;  %v3760_v15 = vpop.f32.mrb[5].mxu0  ;;  %v7444_v32 = vpop.permute.xlu0 %4266  ;;  %vm4338_vm10 = vcmp.eq.s32.totalorder %v7456_v53, 1 }
 0x24e   : > { %v5707_v30 = vadd.f32 %v3760_v15, %v1679_v52  ;;  %v5657_v58 = vpop.f32.mrb[6].mxu0  ;;  %vm4337_vm15 = vcmp.eq.s32.totalorder %v7444_v32, 1 }
 0x24f   : > { %v4470_v3 = vadd.f32 %v4469_v12, %v4435_v21  ;;  %v4393_v1 = vadd.f32 %v4392_v35, %v4358_v22  ;;  %v5708_v40 = vadd.f32 %v5657_v58, %v5397_v41  ;;  %v3763_v0 = vpop.f32.mrb[7].mxu0  ;;  %v4361_v24 = vsel %vm4325_vm5, %v5706_v29, 0.0 }
 0x250   : > { %v4359_v5 = vsel %vm4323_vm2, %v5707_v30, 0.0  ;;  %v5709_v36 = vadd.f32 %v3763_v0, %v7388_v31  ;;  %v4439_v44 = vmul.f32 %v5706_v29, %v4361_v24 }
 0x251   : > { %v4394_v43 = vadd.f32 %v4393_v1, %v4359_v5  ;;  %v4437_v39 = vmul.f32 %v5707_v30, %v4359_v5  ;;  %v4471_v61 = vadd.f32 %v4470_v3, %v4436_v56  ;;  %v4895_v18 = vpack.c.bf16 %v5708_v40, %v5706_v29  ;;  %v7459_v47 = vpop.permute.xlu0 %4272  ;;  %v7466_v56 = vpop.permute.xlu1 %4275 }
 0x252   : > { %v4890_v37 = vpack.c.bf16 %v5709_v36, %v5707_v30  ;;  %v4360_v34 = vsel %vm4324_vm4, %v5709_v36, 0.0  ;;  %v4362_v31 = vsel %vm4326_vm6, %v5708_v40, 0.0  ;;  %vm4339_vm2 = vcmp.eq.s32.totalorder %v7459_v47, 1 }
 0x253   : > { %v4472_v52 = vadd.f32 %v4471_v61, %v4437_v39  ;;  %4969 = vst [vmem:[%s7425_s14 + $0x18] sm:$0xff] %v4895_v18   ;;  %v4395_v41 = vadd.f32 %v4394_v43, %v4360_v34  ;;  %v4438_v25 = vmul.f32 %v5709_v36, %v4360_v34  ;;  %v4440_v50 = vmul.f32 %v5708_v40, %v4362_v31 }
 0x254   : > { %4968 = vst [vmem:[%s7425_s14 + $0x10] sm:$0xff] %v4890_v37   ;;  %v5660_v4 = vpop.f32.mrb[8].mxu0  ;;  %vm4340_vm4 = vcmp.eq.s32.totalorder %v7466_v56, 1 }
 0x255   : > { %v4396_v33 = vadd.f32 %v4395_v41, %v4361_v24  ;;  %v4473_v46 = vadd.f32 %v4472_v52, %v4438_v25  ;;  %v5710_v23 = vadd.f32 %v5660_v4, %v7392_v49  ;;  %v3776_v9 = vpop.f32.mrb[9].mxu0  ;;  %v7469_v1 = vpop.permute.xlu0 %4278 }
 0x256   : > { %v5711_v48 = vadd.f32 %v3776_v9, %v7396_v62  ;;  %v5661_v45 = vpop.f32.mrb[10].mxu0  ;;  %v7477_v27 = vpop.permute.xlu1 %4281  ;;  %vm4341_vm5 = vcmp.eq.s32.totalorder %v7469_v1, 1 }
 0x257   : > { %v4474_v38 = vadd.f32 %v4473_v46, %v4439_v44  ;;  %v4397_v11 = vadd.f32 %v4396_v33, %v4362_v31  ;;  %v5712_v13 = vadd.f32 %v5661_v45, %v7400_v17  ;;  %v3779_v42 = vpop.f32.mrb[11].mxu0  ;;  %v4365_v22 = vsel %vm4329_vm9, %v5710_v23, 0.0 }
 0x258   : > { %v4363_v49 = vsel %vm4327_vm7, %v5711_v48, 0.0  ;;  %v5713_v59 = vadd.f32 %v3779_v42, %v7402_v63  ;;  %v4443_v29 = vmul.f32 %v5710_v23, %v4365_v22  ;;  %vm4342_vm6 = vcmp.eq.s32.totalorder %v7477_v27, 1 }
 0x259   : > { %v4398_v62 = vadd.f32 %v4397_v11, %v4363_v49  ;;  %v4441_v60 = vmul.f32 %v5711_v48, %v4363_v49  ;;  %v4475_v14 = vadd.f32 %v4474_v38, %v4440_v50  ;;  %v4905_v20 = vpack.c.bf16 %v5712_v13, %v5710_v23  ;;  %v7480_v31 = vpop.permute.xlu0 %4284 }
 0x25a   : > { %v4900_v17 = vpack.c.bf16 %v5713_v59, %v5711_v48  ;;  %v4364_v51 = vsel %vm4328_vm8, %v5713_v59, 0.0  ;;  %v4366_v35 = vsel %vm4330_vm11, %v5712_v13, 0.0  ;;  %v7482_v50 = vpop.permute.xlu1 %4287  ;;  %vm4343_vm7 = vcmp.eq.s32.totalorder %v7480_v31, 1 }
 0x25b   : > { %v4476_v26 = vadd.f32 %v4475_v14, %v4441_v60  ;;  %4971 = vst [vmem:[%s7425_s14 + $0x28] sm:$0xff] %v4905_v20   ;;  %v4399_v10 = vadd.f32 %v4398_v62, %v4364_v51  ;;  %v4442_v21 = vmul.f32 %v5713_v59, %v4364_v51  ;;  %v4444_v40 = vmul.f32 %v5712_v13, %v4366_v35 }
 0x25c   : > { %4970 = vst [vmem:[%s7425_s14 + $0x20] sm:$0xff] %v4900_v17   ;;  %v5664_v12 = vpop.f32.mrb[12].mxu0  ;;  %vm4344_vm8 = vcmp.eq.s32.totalorder %v7482_v50, 1 }
 0x25d   : > { %v4400_v63 = vadd.f32 %v4399_v10, %v4365_v22  ;;  %v4477_v15 = vadd.f32 %v4476_v26, %v4442_v21  ;;  %v5714_v30 = vadd.f32 %v5664_v12, %v7408_v54  ;;  %v3792_v58 = vpop.f32.mrb[13].mxu0  ;;  %v7484_v38 = vpop.permute.xlu0 %4290 }
 0x25e   : > { %v5715_v3 = vadd.f32 %v3792_v58, %v7410_v57  ;;  %v5665_v6 = vpop.f32.mrb[14].mxu0  ;;  %v7490_v19 = vpop.permute.xlu1 %4293  ;;  %vm4345_vm9 = vcmp.eq.s32.totalorder %v7484_v38, 1 }
 0x25f   : > { %v4478_v0 = vadd.f32 %v4477_v15, %v4443_v29  ;;  %v4401_v5 = vadd.f32 %v4400_v63, %v4366_v35  ;;  %v5716_v36 = vadd.f32 %v5665_v6, %v7412_v8  ;;  %v3795_v43 = vpop.f32.mrb[15].mxu0  ;;  %v4369_v24 = vsel %vm4333_vm14, %v5714_v30, 0.0 }
 0x260   : > { %v4367_v54 = vsel %vm4331_vm12, %v5715_v3, 0.0  ;;  %v5717_v55 = vadd.f32 %v3795_v43, %v7414_v2  ;;  %v4447_v2 = vmul.f32 %v5714_v30, %v4369_v24  ;;  %vm4346_vm11 = vcmp.eq.s32.totalorder %v7490_v19, 1 }
 0x261   : > { %v4402_v39 = vadd.f32 %v4401_v5, %v4367_v54  ;;  %v4445_v57 = vmul.f32 %v5715_v3, %v4367_v54  ;;  %v4479_v61 = vadd.f32 %v4478_v0, %v4444_v40  ;;  %v4915_v18 = vpack.c.bf16 %v5716_v36, %v5714_v30  ;;  %v7493_v58 = vpop.permute.xlu0 %4296 }
 0x262   : > { %v4910_v37 = vpack.c.bf16 %v5717_v55, %v5715_v3  ;;  %v4368_v34 = vsel %vm4332_vm13, %v5717_v55, 0.0  ;;  %v4370_v7 = vsel %vm4334_vm0, %v5716_v36, 0.0  ;;  %vm4347_vm12 = vcmp.eq.s32.totalorder %v7493_v58, 1 }
 0x263   : > { %v4480_v52 = vadd.f32 %v4479_v61, %v4445_v57  ;;  %4973 = vst [vmem:[%s7425_s14 + $0x38] sm:$0xff] %v4915_v18   ;;  %v4403_v8 = vadd.f32 %v4402_v39, %v4368_v34  ;;  %v4446_v41 = vmul.f32 %v5717_v55, %v4368_v34  ;;  %v4448_v23 = vmul.f32 %v5716_v36, %v4370_v7 }
 0x264   : > { %4972 = vst [vmem:[%s7425_s14 + $0x30] sm:$0xff] %v4910_v37   ;;  %v5668_v25 = vpop.f32.mrb[16].mxu0 }
 0x265   : > { %v4404_v4 = vadd.f32 %v4403_v8, %v4369_v24  ;;  %v4481_v44 = vadd.f32 %v4480_v52, %v4446_v41  ;;  %v3808_v33 = vpop.f32.mrb[17].mxu0  ;;  %v7503_v1 = vpop.permute.xlu0 %4302 }
 0x266   : > { %v5669_v46 = vpop.f32.mrb[18].mxu0  ;;  %vm4349_vm14 = vcmp.eq.s32.totalorder %v7503_v1, 1 }
 0x267   : > { %v4482_v9 = vadd.f32 %v4481_v44, %v4447_v2  ;;  %v3811_v48 = vpop.f32.mrb[19].mxu0  ;;  %v4405_v16 = vadd.f32 %v4404_v4, %v4370_v7 }
 0x269   : > { %v4483_v45 = vadd.f32 %v4482_v9, %v4448_v23 }
 0x26b   : > { %v5460_v11 = vpop.f32.mrb[16].mxu1 }
 0x26c   : > { %v5718_v13 = vadd.f32 %v5668_v25, %v5460_v11  ;;  %v5672_v42 = vpop.f32.mrb[20].mxu0  ;;  %v2198_v49 = vpop.f32.mrb[17].mxu1 }
 0x26d   : > { %v5719_v59 = vadd.f32 %v3808_v33, %v2198_v49  ;;  %v3824_v62 = vpop.f32.mrb[21].mxu0  ;;  %v5461_v60 = vpop.f32.mrb[18].mxu1 }
 0x26e   : > { %v5720_v14 = vadd.f32 %v5669_v46, %v5461_v60  ;;  %v5673_v20 = vpop.f32.mrb[22].mxu0  ;;  %v2201_v22 = vpop.f32.mrb[19].mxu1  ;;  %v4373_v12 = vsel %vm4337_vm15, %v5718_v13, 0.0 }
 0x26f   : > { %v4371_v17 = vsel %vm4335_vm1, %v5719_v59, 0.0  ;;  %v5721_v51 = vadd.f32 %v3811_v48, %v2201_v22  ;;  %v3827_v26 = vpop.f32.mrb[23].mxu0  ;;  %v4451_v32 = vmul.f32 %v5718_v13, %v4373_v12  ;;  %v7500_v33 = vpop.permute.xlu1 %4299 }
 0x270   : > { %v4406_v10 = vadd.f32 %v4405_v16, %v4371_v17  ;;  %v4449_v21 = vmul.f32 %v5719_v59, %v4371_v17  ;;  %v4925_v35 = vpack.c.bf16 %v5720_v14, %v5718_v13  ;;  %v4374_v3 = vsel %vm4338_vm10, %v5720_v14, 0.0 }
 0x271   : > { %v4920_v29 = vpack.c.bf16 %v5721_v51, %v5719_v59  ;;  %v4372_v63 = vsel %vm4336_vm3, %v5721_v51, 0.0  ;;  %v4452_v39 = vmul.f32 %v5720_v14, %v4374_v3  ;;  %vm4348_vm13 = vcmp.eq.s32.totalorder %v7500_v33, 1 }
 0x272   : > { %v4484_v15 = vadd.f32 %v4483_v45, %v4449_v21  ;;  %4975 = vst [vmem:[%s7425_s14 + $0x48] sm:$0xff] %v4925_v35   ;;  %v4407_v30 = vadd.f32 %v4406_v10, %v4372_v63  ;;  %v4450_v28 = vmul.f32 %v5721_v51, %v4372_v63 }
 0x273   : > { %4974 = vst [vmem:[%s7425_s14 + $0x40] sm:$0xff] %v4920_v29   ;;  %v5464_v6 = vpop.f32.mrb[20].mxu1 }
 0x274   : > { %v4408_v40 = vadd.f32 %v4407_v30, %v4373_v12  ;;  %v4485_v0 = vadd.f32 %v4484_v15, %v4450_v28  ;;  %v5722_v5 = vadd.f32 %v5672_v42, %v5464_v6  ;;  %v5676_v36 = vpop.f32.mrb[24].mxu0  ;;  %v2214_v43 = vpop.f32.mrb[21].mxu1 }
 0x275   : > { %v5723_v53 = vadd.f32 %v3824_v62, %v2214_v43  ;;  %v3840_v54 = vpop.f32.mrb[25].mxu0  ;;  %v5465_v55 = vpop.f32.mrb[22].mxu1 }
 0x276   : > { %v4486_v57 = vadd.f32 %v4485_v0, %v4451_v32  ;;  %v4409_v61 = vadd.f32 %v4408_v40, %v4374_v3  ;;  %v5724_v18 = vadd.f32 %v5673_v20, %v5465_v55  ;;  %v5677_v24 = vpop.f32.mrb[26].mxu0  ;;  %v2217_v37 = vpop.f32.mrb[23].mxu1  ;;  %v4377_v2 = vsel %vm4341_vm5, %v5722_v5, 0.0 }
 0x277   : > { %v4375_v34 = vsel %vm4339_vm2, %v5723_v53, 0.0  ;;  %v5725_v52 = vadd.f32 %v3827_v26, %v2217_v37  ;;  %v3843_v8 = vpop.f32.mrb[27].mxu0  ;;  %v4455_v16 = vmul.f32 %v5722_v5, %v4377_v2  ;;  %v4306_v28 = vpop.permute.xlu1 %4305 }
 0x278   : > { %v4410_v41 = vadd.f32 %v4409_v61, %v4375_v34  ;;  %v4453_v47 = vmul.f32 %v5723_v53, %v4375_v34  ;;  %v4487_v7 = vadd.f32 %v4486_v57, %v4452_v39  ;;  %v4935_v25 = vpack.c.bf16 %v5724_v18, %v5722_v5  ;;  %v4309_v32 = vpop.permute.xlu0 %4308 }
 0x279   : > { %v4930_v4 = vpack.c.bf16 %v5725_v52, %v5723_v53  ;;  %v4376_v44 = vsel %vm4340_vm4, %v5725_v52, 0.0  ;;  %v4378_v9 = vsel %vm4342_vm6, %v5724_v18, 0.0  ;;  %vm4350_vm0 = vcmp.eq.s32.totalorder %v4306_v28, 1 }
 0x27a   : > { %v4488_v46 = vadd.f32 %v4487_v7, %v4453_v47  ;;  %4977 = vst [vmem:[%s7425_s14 + $0x58] sm:$0xff] %v4935_v25   ;;  %v4411_v56 = vadd.f32 %v4410_v41, %v4376_v44  ;;  %v4454_v23 = vmul.f32 %v5725_v52, %v4376_v44  ;;  %v4456_v60 = vmul.f32 %v5724_v18, %v4378_v9 }
 0x27b   : > { %4976 = vst [vmem:[%s7425_s14 + $0x50] sm:$0xff] %v4930_v4   ;;  %v5468_v48 = vpop.f32.mrb[24].mxu1  ;;  %vm4351_vm1 = vcmp.eq.s32.totalorder %v4309_v32, 1 }
 0x27c   : > { %v4412_v45 = vadd.f32 %v4411_v56, %v4377_v2  ;;  %v4489_v11 = vadd.f32 %v4488_v46, %v4454_v23  ;;  %v5726_v13 = vadd.f32 %v5676_v36, %v5468_v48  ;;  %v5680_v42 = vpop.f32.mrb[28].mxu0  ;;  %v2230_v49 = vpop.f32.mrb[25].mxu1 }
 0x27d   : > { %v5727_v27 = vadd.f32 %v3840_v54, %v2230_v49  ;;  %v3856_v59 = vpop.f32.mrb[29].mxu0  ;;  %v5469_v62 = vpop.f32.mrb[26].mxu1 }
 0x27e   : > { %v4490_v14 = vadd.f32 %v4489_v11, %v4455_v16  ;;  %v4413_v20 = vadd.f32 %v4412_v45, %v4378_v9  ;;  %v5728_v22 = vadd.f32 %v5677_v24, %v5469_v62  ;;  %v5681_v17 = vpop.f32.mrb[30].mxu0  ;;  %v2233_v51 = vpop.f32.mrb[27].mxu1  ;;  %v4381_v63 = vsel %vm4345_vm9, %v5726_v13, 0.0 }
 0x27f   : > { %v4379_v26 = vsel %vm4343_vm7, %v5727_v27, 0.0  ;;  %v5729_v10 = vadd.f32 %v3843_v8, %v2233_v51  ;;  %v3859_v21 = vpop.f32.mrb[31].mxu0  ;;  %v4459_v0 = vmul.f32 %v5726_v13, %v4381_v63  ;;  %v4312_v2 = vpop.permute.xlu1 %4311 }
 0x280   : > { %v4414_v35 = vadd.f32 %v4413_v20, %v4379_v26  ;;  %v4457_v31 = vmul.f32 %v5727_v27, %v4379_v26  ;;  %v4491_v12 = vadd.f32 %v4490_v14, %v4456_v60  ;;  %v4945_v29 = vpack.c.bf16 %v5728_v22, %v5726_v13  ;;  %v4315_v48 = vpop.permute.xlu0 %4314 }
 0x281   : > { %v4940_v15 = vpack.c.bf16 %v5729_v10, %v5727_v27  ;;  %v4380_v30 = vsel %vm4344_vm8, %v5729_v10, 0.0  ;;  %v4382_v38 = vsel %vm4346_vm11, %v5728_v22, 0.0  ;;  %vm4352_vm3 = vcmp.eq.s32.totalorder %v4312_v2, 1 }
 0x282   : > { %v4492_v3 = vadd.f32 %v4491_v12, %v4457_v31  ;;  %4979 = vst [vmem:[%s7425_s14 + $0x68] sm:$0xff] %v4945_v29   ;;  %v4415_v6 = vadd.f32 %v4414_v35, %v4380_v30  ;;  %v4458_v50 = vmul.f32 %v5729_v10, %v4380_v30  ;;  %v4460_v57 = vmul.f32 %v5728_v22, %v4382_v38 }
 0x283   : > { %4978 = vst [vmem:[%s7425_s14 + $0x60] sm:$0xff] %v4940_v15   ;;  %v5472_v40 = vpop.f32.mrb[28].mxu1  ;;  %vm4353_vm15 = vcmp.eq.s32.totalorder %v4315_v48, 1  ;;  %v4318_v22 = vpop.permute.xlu1 %4317 }
 0x284   : > { %v4416_v5 = vadd.f32 %v4415_v6, %v4381_v63  ;;  %v4493_v36 = vadd.f32 %v4492_v3, %v4458_v50  ;;  %v5730_v43 = vadd.f32 %v5680_v42, %v5472_v40  ;;  %v5684_v53 = vpop.f32.mrb[32].mxu0  ;;  %v2246_v54 = vpop.f32.mrb[29].mxu1  ;;  %vm4354_vm10 = vcmp.eq.s32.totalorder %v4318_v22, 1 }
 0x285   : > { %v5731_v55 = vadd.f32 %v3856_v59, %v2246_v54  ;;  %v3872_v39 = vpop.f32.mrb[33].mxu0  ;;  %v5473_v19 = vpop.f32.mrb[30].mxu1 }
 0x286   : > { %v4494_v61 = vadd.f32 %v4493_v36, %v4459_v0  ;;  %v4417_v18 = vadd.f32 %v4416_v5, %v4382_v38  ;;  %v5732_v24 = vadd.f32 %v5681_v17, %v5473_v19  ;;  %v5685_v37 = vpop.f32.mrb[34].mxu0  ;;  %v2249_v34 = vpop.f32.mrb[31].mxu1  ;;  %v4385_v4 = vsel %vm4349_vm14, %v5730_v43, 0.0 }
 0x287   : > { %v4383_v52 = vsel %vm4347_vm12, %v5731_v55, 0.0  ;;  %v5733_v8 = vadd.f32 %v3859_v21, %v2249_v34  ;;  %v3875_v41 = vpop.f32.mrb[35].mxu0  ;;  %v4463_v16 = vmul.f32 %v5730_v43, %v4385_v4 }
 0x288   : > { %v4418_v47 = vadd.f32 %v4417_v18, %v4383_v52  ;;  %v4461_v58 = vmul.f32 %v5731_v55, %v4383_v52  ;;  %v4495_v7 = vadd.f32 %v4494_v61, %v4460_v57  ;;  %v4955_v25 = vpack.c.bf16 %v5732_v24, %v5730_v43 }
 0x289   : > { %v4950_v44 = vpack.c.bf16 %v5733_v8, %v5731_v55  ;;  %v4384_v46 = vsel %vm4348_vm13, %v5733_v8, 0.0  ;;  %v4386_v9 = vsel %vm4350_vm0, %v5732_v24, 0.0 }
 0x28a   : > { %v4496_v56 = vadd.f32 %v4495_v7, %v4461_v58  ;;  %4981 = vst [vmem:[%s7425_s14 + $0x78] sm:$0xff] %v4955_v25   ;;  %v4419_v23 = vadd.f32 %v4418_v47, %v4384_v46  ;;  %v4462_v33 = vmul.f32 %v5733_v8, %v4384_v46  ;;  %v4464_v59 = vmul.f32 %v5732_v24, %v4386_v9 }
 0x28b   : > { %4980 = vst [vmem:[%s7425_s14 + $0x70] sm:$0xff] %v4950_v44   ;;  %v5476_v1 = vpop.f32.mrb[32].mxu1 }
 0x28c   : > { %v4420_v45 = vadd.f32 %v4419_v23, %v4385_v4  ;;  %v4497_v11 = vadd.f32 %v4496_v56, %v4462_v33  ;;  %v5734_v13 = vadd.f32 %v5684_v53, %v5476_v1  ;;  %v2262_v42 = vpop.f32.mrb[33].mxu1 }
 0x28d   : > { %v5735_v49 = vadd.f32 %v3872_v39, %v2262_v42  ;;  %v5477_v27 = vpop.f32.mrb[34].mxu1 }
 0x28e   : > { %v4498_v62 = vadd.f32 %v4497_v11, %v4463_v16  ;;  %v4421_v60 = vadd.f32 %v4420_v45, %v4386_v9  ;;  %v5736_v14 = vadd.f32 %v5685_v37, %v5477_v27  ;;  %v2265_v20 = vpop.f32.mrb[35].mxu1  ;;  %v4389_v31 = vsel %vm4353_vm15, %v5734_v13, 0.0 }
 0x28f   : > { %v4387_v17 = vsel %vm4351_vm1, %v5735_v49, 0.0  ;;  %v5737_v51 = vadd.f32 %v3875_v41, %v2265_v20  ;;  %v4467_v3 = vmul.f32 %v5734_v13, %v4389_v31 }
 0x290   : > { %v4422_v26 = vadd.f32 %v4421_v60, %v4387_v17  ;;  %v4465_v10 = vmul.f32 %v5735_v49, %v4387_v17  ;;  %v4499_v21 = vadd.f32 %v4498_v62, %v4464_v59  ;;  %v4965_v35 = vpack.c.bf16 %v5736_v14, %v5734_v13 }
 0x291   : > { %v4960_v12 = vpack.c.bf16 %v5737_v51, %v5735_v49  ;;  %v4388_v29 = vsel %vm4352_vm3, %v5737_v51, 0.0  ;;  %v4390_v28 = vsel %vm4354_vm10, %v5736_v14, 0.0 }
 0x292   : > { %v4500_v63 = vadd.f32 %v4499_v21, %v4465_v10  ;;  %4983 = vst [vmem:[%s7425_s14 + $0x88] sm:$0xff] %v4965_v35   ;;  %v4423_v15 = vadd.f32 %v4422_v26, %v4388_v29  ;;  %v4466_v30 = vmul.f32 %v5737_v51, %v4388_v29 }
 0x293   : > { %4982 = vst [vmem:[%s7425_s14 + $0x80] sm:$0xff] %v4960_v12  }
 0x294   : > { %v4424_v6 = vadd.f32 %v4423_v15, %v4389_v31  ;;  %v4501_v50 = vadd.f32 %v4500_v63, %v4466_v30 }
 0x295   : > { %6331 = shalt.err (!%p6328_p7)
}
 0x296   : > { %s6332_s29 = scalar_lea.hbm %s7522_s12, 2304  ;;  %s6336_s8 = scalar_lea.hbm %s7604_s3, 4608 }
 0x297   : > { %p6333_p9 = scmp.ne.s32.totalorder %s7522_s12, %s6332_s29  ;;  %p6337_p5 = scmp.lt.u32.totalorder %s7522_s12, %s7604_s3 }
 0x298   : > { %p6338_p13 = scmp.lt.u32.totalorder %s6336_s8, %s6332_s29  ;;  %p6340_p4 = scmp.lt.u32.totalorder %s6332_s29, %s7522_s12 }
 0x299   : > { %p6334_p1 = pnand %p6333_p9, %p6550_p12 }
 0x29a   : > { %p6339_p2 = por %p6338_p13, %p6337_p5 }
 0x29b   : > { %p6335_p0 = pneg %p6334_p1 }
 0x29c   : > { %p6341_p6 = por %p6340_p4, %p6339_p2 }
 0x29e   : > { %p6342_p8 = pnand %p6341_p6, %p6335_p0 }
 0x2a0   : > { %6345 = shalt.err (!%p6342_p8)
}
 0x2a1   : > { %s6428_s20 = smov 64   ;;  %s6429_s21 = smov 4   ;;  %v4468_v32 = vmul.f32 %v5736_v14, %v4390_v28  ;;  %v4425_v38 = vadd.f32 %v4424_v6, %v4390_v28  ;;  %v4502_v40 = vadd.f32 %v4501_v50, %v4467_v3 }
 0x2a2   : > { %6001 = dma.vmem_to_hbm [thread:$0]  (%p6550_p12), %s7524_s5, 2304, %s7522_s12, %s4512_s13, %s6428_s20, %s6428_s20, %s6429_s21  }
 0x2a3   : > { %v4426_v0 = vrot.slane %v4425_v38, 4  ;;  %v4503_v5 = vadd.f32 %v4502_v40, %v4468_v32  ;;  %s4665_s23 = sshll.u32 %s6601_s11, 1  ;;  %s4838_s7 = sshll.u32 %s6477_s19, 5 }
 0x2a4   : > { %s241_s28 = scalar_lea.vmem [#allocation8], %s4665_s23  ;;  %s7557_s13 = scalar_lea.hbm %s7605_s4, %s4838_s7 }
 0x2a5   : > { %v4427_v36 = vadd.f32 %v4426_v0, %v4425_v38  ;;  %v4504_v43 = vrot.slane %v4503_v5, 4  ;;  %s4546_s9 = sshll.u32 %s241_s28, 4  ;;  %s4517_s10 = scalar_lea.sflag [#allocation9], %s6601_s11  ;;  %s7559_s9 = int_to_ptr.vmem [resolvable:$true] %s4546_s9 }
 0x2a6   : > { %s6346_s29 = scalar_lea.vmem %s7559_s9, 32  ;;  %s6430_s19 = smov [#allocation8]  }
 0x2a7   : > { %v4428_v53 = vrot.slane %v4427_v36, 2  ;;  %v4505_v54 = vadd.f32 %v4504_v43, %v4503_v5  ;;  %p6347_p10 = scmp.ne.s32.totalorder %s7559_s9, %s6346_s29  ;;  %s6350_s26 = sshll.u32 %s6430_s19, 4  ;;  %s6351_s26 = int_to_ptr.vmem [resolvable:$false] %s6350_s26 }
 0x2a8   : > { %s6352_s6 = scalar_lea.vmem %s6351_s26, 64  ;;  %p6353_p7 = scmp.lt.s32.totalorder %s7559_s9, %s6351_s26 }
 0x2a9   : > { %v4429_v55 = vadd.f32 %v4428_v53, %v4427_v36  ;;  %v4506_v39 = vrot.slane %v4505_v54, 2  ;;  %p6348_p11 = pnand %p6347_p10, %p6550_p12  ;;  %p6354_p9 = scmp.lt.s32.totalorder %s6352_s6, %s6346_s29 }
 0x2ab   : > { %v4430_v19 = vrot.slane %v4429_v55, 1  ;;  %v4507_v57 = vadd.f32 %v4506_v39, %v4505_v54  ;;  %p6349_p3 = pneg %p6348_p11  ;;  %p6355_p1 = por %p6354_p9, %p6353_p7 }
 0x2ad   : > { %v4431_v61 = vadd.f32 %v4430_v19, %v4429_v55  ;;  %v4508_v18 = vrot.slane %v4507_v57, 1  ;;  %p6356_p0 = pnand %p6355_p1, %p6349_p3 }
 0x2af   : > { %4432 = vst [vmem:[%s241_s28] sm:$0x1] %v4431_v61  ;;  %v4509_v24 = vadd.f32 %v4508_v18, %v4507_v57 }
 0x2b1   : > { %4510 = vst [vmem:[%s241_s28 + $0x1] sm:$0x1] %v4509_v24 }
 0x2b2   : > { %6359 = shalt.err (!%p6356_p0)
}
 0x2b3   : > { %s6360_s11 = scalar_lea.hbm %s7557_s13, 32  ;;  %s6364_s14 = scalar_lea.hbm %s7605_s4, 64 }
 0x2b4   : > { %p6361_p5 = scmp.ne.s32.totalorder %s7557_s13, %s6360_s11  ;;  %p6365_p4 = scmp.lt.u32.totalorder %s7557_s13, %s7605_s4 }
 0x2b5   : > { %p6366_p6 = scmp.lt.u32.totalorder %s6364_s14, %s6360_s11  ;;  %p6368_p10 = scmp.lt.u32.totalorder %s6360_s11, %s7557_s13 }
 0x2b6   : > { %p6362_p13 = pnand %p6361_p5, %p6550_p12 }
 0x2b7   : > { %p6367_p8 = por %p6366_p6, %p6365_p4 }
 0x2b8   : > { %p6363_p2 = pneg %p6362_p13 }
 0x2b9   : > { %p6369_p11 = por %p6368_p10, %p6367_p8 }
 0x2bb   : > { %p6370_p3 = pnand %p6369_p11, %p6363_p2 }
 0x2bd   : > { %6373 = shalt.err (!%p6370_p3)
}
 0x2be   : > { %6002 = dma.vmem_to_hbm [thread:$0]  (%p6550_p12), %s7559_s9, 32, %s7557_s13, %s4517_s10  }
 0x2bf PF: > { %s4558_s23 = sand.u32 1, %s6408_s15   ;;  %p7620_p7 = scmp.ne.s32.totalorder %s7610_s22, 0 }
 0x2c0   : > { %p7621_p9 = scmp.ge.s32.totalorder %s6420_s18, 2  ;;  %s4559_s7 = scalar_lea.sflag [#allocation4], %s4558_s23 }
 0x2c2   : > { %p6014_p1 = pnand %p7621_p9, %p7620_p7 }
 0x2c4   : > { %6399 = dma.done.wait (!%p6014_p1), %s4559_s7, 2304  }
 0x2c5   : > { %6401 = vsyncadd (!%p6014_p1), %s4559_s7, 4294964992  ;;  %s4568_s28 = scalar_lea.sflag [#allocation9], %s4558_s23 }
 0x2c6   : > { %6403 = dma.done.wait (!%p6014_p1), %s4568_s28, 32  }
 0x2c7   : > { %6405 = vsyncadd (!%p6014_p1), %s4568_s28, 4294967264  ;;  %p22_p12 = scmp.ge.s32.totalorder %s6512_s27, 4   ;;  %s7622_s15 = smov %s6412_s16 }
 0x2c8   : > { %s7623_s16 = smov %s6416_s17  ;;  %s7624_s17 = smov %s6546_s24 }
 0x2c9   : > { %s7625_s18 = smov %s6512_s27  ;;  %24 = sbr.rel (!%p22_p12) target bundleno = 8 (0x8), region = 106 }
 0x2d0   :  { %4573 = vsyncpa [#allocation3], 1 }
 0x2d1   :  { %4575 = vsyncpa [#allocation3 + $0x1], 1 }
 0x2d2   :  { %4576 = vsyncpa [#allocation6], 1 }
 0x2d3   :  { %4577 = vsyncpa [#allocation4], 1 }
 0x2d4   :  { %4579 = vsyncpa [#allocation4 + $0x1], 1 }
 0x2d5   :  { %4580 = vsyncpa [#allocation9], 1 }
 0x2d6   :  { %4582 = vsyncpa [#allocation9 + $0x1], 1 }

</bundles_post_ra>
